<compile_context>
chip_gen: v7x
topology: tpu7x:2x2x1
jax: 0.10.0
libtpu: 0.0.40
codegen_flags: <defaults>
</compile_context>

<pallas_src>
import functools

import numpy as np
import jax
import jax.numpy as jnp
from jax.experimental import pallas as pl
from jax.experimental.pallas import tpu as pltpu


# --------------------------- fused multi-layer kernel ------------------------

def _fused_residual_gru_kernel(x_hbm, wih_ref, whh_ref, bih_ref, bhh_ref,
                               gamma_ref, beta_ref,
                               out_ref, hidden_ref, gx):
    """One grid step == one GRU layer (+ residual + deferred LayerNorm).

    x_hbm      : (T*BP, H)   projected input sequence, HBM (pl.ANY), read once
    wih_ref    : (H, 3H)     fused input->hidden weights (gate order r|z|n)
    whh_ref    : (H, 3H)     fused hidden->hidden weights
    bih/bhh    : (1, 3H)
    gamma/beta : (1, H)      LayerNorm affine params for this layer
    out_ref    : (T*BP, H)   resident across layers; holds the current layer's
                             input on entry, its normalized output on exit
    hidden_ref : (BP, H)     final raw hidden state of this layer
    gx         : VMEM (T*BP, 3H) f32 hoisted input->gate activations
    """
    BP, H = hidden_ref.shape
    TB = out_ref.shape[0]
    T = TB // BP
    layer = pl.program_id(0)

    # Layer 0: seed the resident sequence buffer straight from HBM. For
    # layer > 0, out_ref already holds the previous layer's output.
    @pl.when(layer == 0)
    def _():
        pltpu.sync_copy(x_hbm, out_ref)

    # ---- Prologue: hoist x @ W_ih out of the recurrence. One fused GEMM for
    # all three gates, written directly into the single gate scratch. ----
    seq = out_ref[...].astype(jnp.float32)                          # (TB, H)
    gx[...] = (jnp.dot(seq, wih_ref[...], preferred_element_type=jnp.float32)
               + bih_ref[...])                                      # (TB, 3H)

    # Hoist loop-invariant loads.
    whh = whh_ref[...]                                              # (H, 3H)
    bhh = bhh_ref[...]                                              # (1, 3H)

    # ---- Sequential recurrence: ONE h @ W_hh GEMM + gate math per step.
    # LayerNorm is deferred; only the raw residual sum is stored. ----
    def step(t, h):
        row = pl.multiple_of(t * BP, BP)                            # sublane-aligned
        gh = jnp.dot(h, whh, preferred_element_type=jnp.float32) + bhh   # (BP, 3H)
        gi = gx[pl.ds(row, BP), :]                                  # (BP, 3H)
        rz = jax.nn.sigmoid(gi[:, :2 * H] + gh[:, :2 * H])          # r | z together
        r = rz[:, :H]
        z = rz[:, H:]
        n = jnp.tanh(gi[:, 2 * H:] + r * gh[:, 2 * H:])
        h_new = (1.0 - z) * n + z * h
        # residual add only; x_t (this layer's input) is read before overwrite
        x_t = out_ref[pl.ds(row, BP), :].astype(jnp.float32)
        out_ref[pl.ds(row, BP), :] = (h_new + x_t).astype(out_ref.dtype)
        return h_new

    h0 = jnp.zeros((BP, H), jnp.float32)        # hidden=None -> zeros per layer
    h_last = jax.lax.fori_loop(0, T, step, h0, unroll=min(T, 8))
    hidden_ref[...] = h_last.astype(hidden_ref.dtype)               # once per layer

    # ---- Deferred LayerNorm (eps=1e-5, biased var) over the whole sequence
    # at full vector width; result is the next layer's input / final output. ----
    y = out_ref[...].astype(jnp.float32)
    mean = jnp.mean(y, axis=-1, keepdims=True)
    var = jnp.mean((y - mean) ** 2, axis=-1, keepdims=True)
    y = (y - mean) * jax.lax.rsqrt(var + 1e-5)
    out_ref[...] = (y * gamma_ref[...] + beta_ref[...]).astype(out_ref.dtype)


def _vmem_limit_bytes(TB, BP, H, L):
    """Derive a VMEM budget from the actual working set (clamped for v7x)."""
    f32 = 4
    work = (2 * TB * H              # resident sequence buffer (+1 spare)
            + TB * 3 * H            # fused gate scratch
            + 2 * 2 * H * 3 * H     # double-buffered W_ih / W_hh
            + 2 * BP * H            # hidden output block
            + 4 * 3 * H + 4 * H     # biases + LN params (double-buffered)
            ) * f32
    return int(min(56 * 1024 * 1024, max(16 * 1024 * 1024, 2 * work + (2 << 20))))


def fused_residual_gru(x_flat, wih, whh, bih, bhh, gamma, beta, *, batch_padded):
    """x_flat: (T*BP, H). Returns ((T*BP, H) output, (L, BP, H) hidden)."""
    TB, H = x_flat.shape
    L = wih.shape[0]
    BP = batch_padded

    grid_spec = pltpu.PrefetchScalarGridSpec(
        num_scalar_prefetch=0,
        grid=(L,),
        in_specs=[
            pl.BlockSpec(memory_space=pl.ANY),                             # x (HBM, layer 0 only)
            pl.BlockSpec((pl.Squeezed(), H, 3 * H), lambda l: (l, 0, 0)),  # W_ih fused
            pl.BlockSpec((pl.Squeezed(), H, 3 * H), lambda l: (l, 0, 0)),  # W_hh fused
            pl.BlockSpec((pl.Squeezed(), 1, 3 * H), lambda l: (l, 0, 0)),  # b_ih
            pl.BlockSpec((pl.Squeezed(), 1, 3 * H), lambda l: (l, 0, 0)),  # b_hh
            pl.BlockSpec((pl.Squeezed(), 1, H), lambda l: (l, 0, 0)),      # gamma
            pl.BlockSpec((pl.Squeezed(), 1, H), lambda l: (l, 0, 0)),      # beta
        ],
        out_specs=(
            pl.BlockSpec((TB, H), lambda l: (0, 0)),                # resident across layers
            pl.BlockSpec((pl.Squeezed(), BP, H), lambda l: (l, 0, 0)),
        ),
        scratch_shapes=[pltpu.VMEM((TB, 3 * H), jnp.float32)],      # fused gate scratch
    )

    flops = int(4 * L * TB * H * 3 * H)                 # prologue + recurrence GEMMs
    transcendentals = int(L * TB * (3 * H + 1))         # sigmoid/tanh + rsqrt
    bytes_accessed = int(4 * (2 * TB * H
                              + L * (2 * H * 3 * H + 2 * 3 * H + 2 * H)
                              + L * BP * H))

    return pl.pallas_call(
        _fused_residual_gru_kernel,
        out_shape=(
            jax.ShapeDtypeStruct((TB, H), x_flat.dtype),
            jax.ShapeDtypeStruct((L, BP, H), x_flat.dtype),
        ),
        grid_spec=grid_spec,
        input_output_aliases={0: 0},          # x_flat's HBM buffer doubles as the output buffer
        compiler_params=pltpu.CompilerParams(
            dimension_semantics=("arbitrary",),          # layers are sequential
            vmem_limit_bytes=_vmem_limit_bytes(TB, BP, H, L),
        ),
        cost_estimate=pl.CostEstimate(
            flops=flops,
            transcendentals=transcendentals,
            bytes_accessed=bytes_accessed),
    )(x_flat, wih, whh, bih, bhh, gamma, beta)


# ------------------------------ parameter setup ------------------------------

def init_residual_gru_params(key, input_size, hidden_size, num_layers):
    """Deterministic init matching the PyTorch module's parameter shapes.

    GRU weights are stored pre-transposed and gate-fused as (L, H, 3H) with
    gate order (r, z, n), so x @ w[l] gives all three gate pre-activations.
    """
    H = hidden_size
    params = {}
    keys = jax.random.split(key, 2 + 4 * num_layers)
    if input_size != hidden_size:
        bound = 1.0 / float(np.sqrt(input_size))
        params["proj_w"] = jax.random.uniform(
            keys[0], (input_size, H), jnp.float32, -bound, bound)   # W^T
        params["proj_b"] = jax.random.uniform(
            keys[1], (1, H), jnp.float32, -bound, bound)

    bound = 1.0 / float(np.sqrt(H))
    u = lambda k, s: jax.random.uniform(k, s, jnp.float32, -bound, bound)
    wih, whh, bih, bhh = [], [], [], []
    for i in range(num_layers):
        k0, k1, k2, k3 = keys[2 + 4 * i: 6 + 4 * i]
        wih.append(u(k0, (H, 3 * H)))
        whh.append(u(k1, (H, 3 * H)))
        bih.append(u(k2, (1, 3 * H)))
        bhh.append(u(k3, (1, 3 * H)))
    params["wih"] = jnp.stack(wih)                      # (L, H, 3H)
    params["whh"] = jnp.stack(whh)                      # (L, H, 3H)
    params["bih"] = jnp.stack(bih)                      # (L, 1, 3H)
    params["bhh"] = jnp.stack(bhh)                      # (L, 1, 3H)
    params["gamma"] = jnp.ones((num_layers, 1, H), jnp.float32)
    params["beta"] = jnp.zeros((num_layers, 1, H), jnp.float32)
    return params


# ------------------------------ forward pass ---------------------------------

@functools.partial(jax.jit, static_argnames=("hidden_size", "num_layers"))
def residual_gru_forward(params, x, *, hidden_size, num_layers):
    """x: (B, T, input_size), batch_first. Returns (output (B,T,H), hidden (L,B,H))."""
    B, T, Fin = x.shape
    H = hidden_size
    hp = jax.lax.Precision.HIGHEST

    # Tiny input projection: left to plain XLA (a dedicated kernel would be
    # pure launch overhead).
    if "proj_w" in params:
        out = (jnp.dot(x.reshape(B * T, Fin), params["proj_w"], precision=hp)
               + params["proj_b"]).reshape(B, T, H)
    else:
        out = x.astype(jnp.float32)

    # Pad batch to a multiple of 8 sublanes so per-timestep (BP, H) tiles are
    # tile-aligned inside the kernel; padded rows are zeros and get sliced off.
    BP = ((B + 7) // 8) * 8
    if BP != B:
        out = jnp.pad(out, ((0, BP - B), (0, 0), (0, 0)))

    # Time-major, flattened to (T*BP, H): one layout shuffle for all layers.
    x_flat = jnp.transpose(out, (1, 0, 2)).reshape(T * BP, H)

    out_flat, hidden = fused_residual_gru(
        x_flat, params["wih"], params["whh"], params["bih"], params["bhh"],
        params["gamma"], params["beta"], batch_padded=BP)

    output = jnp.transpose(out_flat.reshape(T, BP, H), (1, 0, 2))[:B]
    return output, hidden[:, :B, :]


# ------------------------------ pure-JAX reference ---------------------------

def residual_gru_reference(params, x, *, hidden_size, num_layers):
    B, T, Fin = x.shape
    H = hidden_size
    hp = jax.lax.Precision.HIGHEST
    if "proj_w" in params:
        out = (jnp.dot(x.reshape(B * T, Fin), params["proj_w"], precision=hp)
               + params["proj_b"]).reshape(B, T, H)
    else:
        out = x.astype(jnp.float32)
    hiddens = []
    for l in range(num_layers):
        wih, whh = params["wih"][l], params["whh"][l]
        bih, bhh = params["bih"][l], params["bhh"][l]
        gamma, beta = params["gamma"][l], params["beta"][l]
        h = jnp.zeros((B, H), jnp.float32)
        ys = []
        for t in range(T):
            x_t = out[:, t, :]
            gi = jnp.dot(x_t, wih, precision=hp) + bih
            gh = jnp.dot(h, whh, precision=hp) + bhh
            r = jax.nn.sigmoid(gi[:, :H] + gh[:, :H])
            z = jax.nn.sigmoid(gi[:, H:2 * H] + gh[:, H:2 * H])
            n = jnp.tanh(gi[:, 2 * H:] + r * gh[:, 2 * H:])
            h = (1.0 - z) * n + z * h
            y = h + x_t
            mean = jnp.mean(y, axis=-1, keepdims=True)
            var = jnp.mean((y - mean) ** 2, axis=-1, keepdims=True)
            ys.append((y - mean) / jnp.sqrt(var + 1e-5) * gamma + beta)
        out = jnp.stack(ys, axis=1)
        hiddens.append(h)
    return out, jnp.stack(hiddens, axis=0)


# ----------------------------------- main ------------------------------------

if __name__ == "__main__":
    batch, seq, input_size, hidden_size, num_layers = 2, 8, 12, 32, 2

    key = jax.random.PRNGKey(0)
    key_x, key_p = jax.random.split(key)
    x = jax.random.normal(key_x, (batch, seq, input_size), dtype=jnp.float32)
    params = init_residual_gru_params(key_p, input_size, hidden_size, num_layers)

    output, hidden = residual_gru_forward(
        params, x, hidden_size=hidden_size, num_layers=num_layers)
    jax.block_until_ready((output, hidden))

    assert output.shape == (batch, seq, hidden_size)
    assert hidden.shape == (num_layers, batch, hidden_size)
    assert bool(jnp.all(jnp.isfinite(output))) and bool(jnp.all(jnp.isfinite(hidden)))

    ref_out, ref_hid = residual_gru_reference(
        params, x, hidden_size=hidden_size, num_layers=num_layers)
    # All math stays in f32 (no bf16 MXU operands), so the tolerance is
    # tightened vs. the previous 3e-2; residual slack covers transcendental /
    # accumulation-order differences between MXU and the XLA reference.
    np.testing.assert_allclose(np.asarray(output), np.asarray(ref_out),
                               rtol=1e-2, atol=1e-2)
    np.testing.assert_allclose(np.asarray(hidden), np.asarray(ref_hid),
                               rtol=1e-2, atol=1e-2)
    print("KERNEL_OK")
</pallas_src>

<mosaic_0001>
module attributes {stable_mosaic.version = 11 : i64} {
  func.func @_fused_residual_gru_kernel(%arg0: i32, %arg1: memref<64x32xf32, #tpu.memory_space<any>>, %arg2: memref<1x32x96xf32, #tpu.memory_space<vmem>>, %arg3: memref<1x32x96xf32, #tpu.memory_space<vmem>>, %arg4: memref<1x1x96xf32, #tpu.memory_space<vmem>>, %arg5: memref<1x1x96xf32, #tpu.memory_space<vmem>>, %arg6: memref<1x1x32xf32, #tpu.memory_space<vmem>>, %arg7: memref<1x1x32xf32, #tpu.memory_space<vmem>>, %arg8: memref<64x32xf32, #tpu.memory_space<vmem>>, %arg9: memref<1x8x32xf32, #tpu.memory_space<vmem>>, %arg10: memref<64x96xf32, #tpu.memory_space<vmem>>) attributes {dimension_semantics = [#tpu.dimension_semantics<arbitrary>], iteration_bounds = array<i64: 2>, scalar_prefetch = 0 : i64, scratch_operands = 1 : i64, tpu.core_type = #tpu.core_type<tc>, window_params = [{}, {transform_indices = @transform_1, window_bounds = array<i64: 1, 32, 96>}, {transform_indices = @transform_2, window_bounds = array<i64: 1, 32, 96>}, {transform_indices = @transform_3, window_bounds = array<i64: 1, 1, 96>}, {transform_indices = @transform_4, window_bounds = array<i64: 1, 1, 96>}, {transform_indices = @transform_5, window_bounds = array<i64: 1, 1, 32>}, {transform_indices = @transform_6, window_bounds = array<i64: 1, 1, 32>}, {pipeline_mode = #tpu.pipeline_mode<synchronous>, transform_indices = @transform_7, window_bounds = array<i64: 64, 32>}, {transform_indices = @transform_8, window_bounds = array<i64: 1, 8, 32>}]} {
    %c0_i32 = arith.constant 0 : i32
    %0 = arith.cmpi eq, %arg0, %c0_i32 : i32
    %1 = arith.extui %0 : i1 to i32
    %c0_i32_0 = arith.constant 0 : i32
    %2 = arith.cmpi ne, %1, %c0_i32_0 : i32
    scf.if %2 {
      "tpu.region"() ({
        %304 = tpu.sem_alloc : memref<!tpu.dma_semaphore, #tpu.memory_space<semaphore_mem>>
        tpu.enqueue_dma source(%arg1 : memref<64x32xf32, #tpu.memory_space<any>>) target(%arg8 : memref<64x32xf32, #tpu.memory_space<vmem>>) target_semaphore(%304 : memref<!tpu.dma_semaphore, #tpu.memory_space<semaphore_mem>>)
        tpu.wait_dma2 semaphore(%304 : memref<!tpu.dma_semaphore, #tpu.memory_space<semaphore_mem>>) src(%arg1 : memref<64x32xf32, #tpu.memory_space<any>>) dst(%arg8 : memref<64x32xf32, #tpu.memory_space<vmem>>)
        tpu.yield
      }) : () -> ()
    } else {
    }
    %c0 = arith.constant 0 : index
    %c0_1 = arith.constant 0 : index
    %3 = vector.load %arg8[%c0, %c0_1] : memref<64x32xf32, #tpu.memory_space<vmem>>, vector<64x32xf32>
    %c0_2 = arith.constant 0 : index
    %c0_3 = arith.constant 0 : index
    %c0_4 = arith.constant 0 : index
    %4 = vector.load %arg2[%c0_2, %c0_3, %c0_4] : memref<1x32x96xf32, #tpu.memory_space<vmem>>, vector<1x32x96xf32>
    %5 = vector.shape_cast %4 : vector<1x32x96xf32> to vector<32x96xf32>
    %cst = arith.constant dense<0.000000e+00> : vector<64x96xf32>
    %6 = tpu.matmul %3, %5, %cst {dimension_numbers = #tpu.dot_dimension_numbers<[1], [0], [0], [1], [0, 0, 1, 1], [], []>} : vector<64x32xf32>, vector<32x96xf32>, vector<64x96xf32> -> vector<64x96xf32>
    %c0_5 = arith.constant 0 : index
    %c0_6 = arith.constant 0 : index
    %c0_7 = arith.constant 0 : index
    %7 = vector.load %arg4[%c0_5, %c0_6, %c0_7] : memref<1x1x96xf32, #tpu.memory_space<vmem>>, vector<1x1x96xf32>
    %8 = vector.shape_cast %7 : vector<1x1x96xf32> to vector<1x96xf32>
    %9 = vector.broadcast %8 : vector<1x96xf32> to vector<64x96xf32>
    %10 = arith.addf %6, %9 : vector<64x96xf32>
    %c0_8 = arith.constant 0 : index
    %c0_9 = arith.constant 0 : index
    %11 = vector.load %arg10[%c0_8, %c0_9] : memref<64x96xf32, #tpu.memory_space<vmem>>, vector<64x96xf32>
    tpu.vector_store %arg10[%c0_8, %c0_9], %10 {strides = array<i32>} : memref<64x96xf32, #tpu.memory_space<vmem>>, vector<64x96xf32>,
    %c0_10 = arith.constant 0 : index
    %c0_11 = arith.constant 0 : index
    %c0_12 = arith.constant 0 : index
    %12 = vector.load %arg3[%c0_10, %c0_11, %c0_12] : memref<1x32x96xf32, #tpu.memory_space<vmem>>, vector<1x32x96xf32>
    %13 = vector.shape_cast %12 : vector<1x32x96xf32> to vector<32x96xf32>
    %c0_13 = arith.constant 0 : index
    %c0_14 = arith.constant 0 : index
    %c0_15 = arith.constant 0 : index
    %14 = vector.load %arg5[%c0_13, %c0_14, %c0_15] : memref<1x1x96xf32, #tpu.memory_space<vmem>>, vector<1x1x96xf32>
    %15 = vector.shape_cast %14 : vector<1x1x96xf32> to vector<1x96xf32>
    %cst_16 = arith.constant 0.000000e+00 : f32
    %16 = vector.broadcast %cst_16 : f32 to vector<8x32xf32>
    %c0_i32_17 = arith.constant 0 : i32
    %c8_i32 = arith.constant 8 : i32
    %17 = arith.muli %c0_i32_17, %c8_i32 : i32
    %18 = tpu.assume_multiple %17, 8 : i32
    %cst_18 = arith.constant dense<0.000000e+00> : vector<8x96xf32>
    %19 = tpu.matmul %16, %13, %cst_18 {dimension_numbers = #tpu.dot_dimension_numbers<[1], [0], [0], [1], [0, 0, 1, 1], [], []>} : vector<8x32xf32>, vector<32x96xf32>, vector<8x96xf32> -> vector<8x96xf32>
    %20 = vector.broadcast %15 : vector<1x96xf32> to vector<8x96xf32>
    %21 = arith.addf %19, %20 : vector<8x96xf32>
    %22 = arith.index_cast %18 : i32 to index
    %c0_19 = arith.constant 0 : index
    %23 = vector.load %arg10[%22, %c0_19] : memref<64x96xf32, #tpu.memory_space<vmem>>, vector<8x96xf32>
    %24 = vector.extract_strided_slice %23 {offsets = [0, 0], sizes = [8, 64], strides = [1, 1]} : vector<8x96xf32> to vector<8x64xf32>
    %25 = vector.extract_strided_slice %21 {offsets = [0, 0], sizes = [8, 64], strides = [1, 1]} : vector<8x96xf32> to vector<8x64xf32>
    %26 = arith.addf %24, %25 : vector<8x64xf32>
    %27 = arith.negf %26 : vector<8x64xf32>
    %28 = math.exp %27 : vector<8x64xf32>
    %cst_20 = arith.constant 1.000000e+00 : f32
    %29 = vector.broadcast %cst_20 : f32 to vector<8x64xf32>
    %30 = arith.addf %29, %28 : vector<8x64xf32>
    %31 = arith.divf %29, %30 : vector<8x64xf32>
    %32 = vector.extract_strided_slice %31 {offsets = [0, 0], sizes = [8, 32], strides = [1, 1]} : vector<8x64xf32> to vector<8x32xf32>
    %33 = vector.extract_strided_slice %31 {offsets = [0, 32], sizes = [8, 32], strides = [1, 1]} : vector<8x64xf32> to vector<8x32xf32>
    %34 = vector.extract_strided_slice %23 {offsets = [0, 64], sizes = [8, 32], strides = [1, 1]} : vector<8x96xf32> to vector<8x32xf32>
    %35 = vector.extract_strided_slice %21 {offsets = [0, 64], sizes = [8, 32], strides = [1, 1]} : vector<8x96xf32> to vector<8x32xf32>
    %36 = arith.mulf %32, %35 : vector<8x32xf32>
    %37 = arith.addf %34, %36 : vector<8x32xf32>
    %38 = math.tanh %37 : vector<8x32xf32>
    %cst_21 = arith.constant 1.000000e+00 : f32
    %39 = vector.broadcast %cst_21 : f32 to vector<8x32xf32>
    %40 = arith.subf %39, %33 : vector<8x32xf32>
    %41 = arith.mulf %40, %38 : vector<8x32xf32>
    %42 = arith.mulf %33, %16 : vector<8x32xf32>
    %43 = arith.addf %41, %42 : vector<8x32xf32>
    %44 = arith.index_cast %18 : i32 to index
    %c0_22 = arith.constant 0 : index
    %45 = vector.load %arg8[%44, %c0_22] : memref<64x32xf32, #tpu.memory_space<vmem>>, vector<8x32xf32>
    %46 = arith.addf %43, %45 : vector<8x32xf32>
    %47 = arith.index_cast %18 : i32 to index
    %c0_23 = arith.constant 0 : index
    %48 = vector.load %arg8[%47, %c0_23] : memref<64x32xf32, #tpu.memory_space<vmem>>, vector<8x32xf32>
    tpu.vector_store %arg8[%47, %c0_23], %46 {strides = array<i32>} : memref<64x32xf32, #tpu.memory_space<vmem>>, vector<8x32xf32>,
    %c1_i32 = arith.constant 1 : i32
    %c8_i32_24 = arith.constant 8 : i32
    %49 = arith.muli %c1_i32, %c8_i32_24 : i32
    %50 = tpu.assume_multiple %49, 8 : i32
    %cst_25 = arith.constant dense<0.000000e+00> : vector<8x96xf32>
    %51 = tpu.matmul %43, %13, %cst_25 {dimension_numbers = #tpu.dot_dimension_numbers<[1], [0], [0], [1], [0, 0, 1, 1], [], []>} : vector<8x32xf32>, vector<32x96xf32>, vector<8x96xf32> -> vector<8x96xf32>
    %52 = vector.broadcast %15 : vector<1x96xf32> to vector<8x96xf32>
    %53 = arith.addf %51, %52 : vector<8x96xf32>
    %54 = arith.index_cast %50 : i32 to index
    %c0_26 = arith.constant 0 : index
    %55 = vector.load %arg10[%54, %c0_26] : memref<64x96xf32, #tpu.memory_space<vmem>>, vector<8x96xf32>
    %56 = vector.extract_strided_slice %55 {offsets = [0, 0], sizes = [8, 64], strides = [1, 1]} : vector<8x96xf32> to vector<8x64xf32>
    %57 = vector.extract_strided_slice %53 {offsets = [0, 0], sizes = [8, 64], strides = [1, 1]} : vector<8x96xf32> to vector<8x64xf32>
    %58 = arith.addf %56, %57 : vector<8x64xf32>
    %59 = arith.negf %58 : vector<8x64xf32>
    %60 = math.exp %59 : vector<8x64xf32>
    %cst_27 = arith.constant 1.000000e+00 : f32
    %61 = vector.broadcast %cst_27 : f32 to vector<8x64xf32>
    %62 = arith.addf %61, %60 : vector<8x64xf32>
    %63 = arith.divf %61, %62 : vector<8x64xf32>
    %64 = vector.extract_strided_slice %63 {offsets = [0, 0], sizes = [8, 32], strides = [1, 1]} : vector<8x64xf32> to vector<8x32xf32>
    %65 = vector.extract_strided_slice %63 {offsets = [0, 32], sizes = [8, 32], strides = [1, 1]} : vector<8x64xf32> to vector<8x32xf32>
    %66 = vector.extract_strided_slice %55 {offsets = [0, 64], sizes = [8, 32], strides = [1, 1]} : vector<8x96xf32> to vector<8x32xf32>
    %67 = vector.extract_strided_slice %53 {offsets = [0, 64], sizes = [8, 32], strides = [1, 1]} : vector<8x96xf32> to vector<8x32xf32>
    %68 = arith.mulf %64, %67 : vector<8x32xf32>
    %69 = arith.addf %66, %68 : vector<8x32xf32>
    %70 = math.tanh %69 : vector<8x32xf32>
    %cst_28 = arith.constant 1.000000e+00 : f32
    %71 = vector.broadcast %cst_28 : f32 to vector<8x32xf32>
    %72 = arith.subf %71, %65 : vector<8x32xf32>
    %73 = arith.mulf %72, %70 : vector<8x32xf32>
    %74 = arith.mulf %65, %43 : vector<8x32xf32>
    %75 = arith.addf %73, %74 : vector<8x32xf32>
    %76 = arith.index_cast %50 : i32 to index
    %c0_29 = arith.constant 0 : index
    %77 = vector.load %arg8[%76, %c0_29] : memref<64x32xf32, #tpu.memory_space<vmem>>, vector<8x32xf32>
    %78 = arith.addf %75, %77 : vector<8x32xf32>
    %79 = arith.index_cast %50 : i32 to index
    %c0_30 = arith.constant 0 : index
    %80 = vector.load %arg8[%79, %c0_30] : memref<64x32xf32, #tpu.memory_space<vmem>>, vector<8x32xf32>
    tpu.vector_store %arg8[%79, %c0_30], %78 {strides = array<i32>} : memref<64x32xf32, #tpu.memory_space<vmem>>, vector<8x32xf32>,
    %c2_i32 = arith.constant 2 : i32
    %c8_i32_31 = arith.constant 8 : i32
    %81 = arith.muli %c2_i32, %c8_i32_31 : i32
    %82 = tpu.assume_multiple %81, 8 : i32
    %cst_32 = arith.constant dense<0.000000e+00> : vector<8x96xf32>
    %83 = tpu.matmul %75, %13, %cst_32 {dimension_numbers = #tpu.dot_dimension_numbers<[1], [0], [0], [1], [0, 0, 1, 1], [], []>} : vector<8x32xf32>, vector<32x96xf32>, vector<8x96xf32> -> vector<8x96xf32>
    %84 = vector.broadcast %15 : vector<1x96xf32> to vector<8x96xf32>
    %85 = arith.addf %83, %84 : vector<8x96xf32>
    %86 = arith.index_cast %82 : i32 to index
    %c0_33 = arith.constant 0 : index
    %87 = vector.load %arg10[%86, %c0_33] : memref<64x96xf32, #tpu.memory_space<vmem>>, vector<8x96xf32>
    %88 = vector.extract_strided_slice %87 {offsets = [0, 0], sizes = [8, 64], strides = [1, 1]} : vector<8x96xf32> to vector<8x64xf32>
    %89 = vector.extract_strided_slice %85 {offsets = [0, 0], sizes = [8, 64], strides = [1, 1]} : vector<8x96xf32> to vector<8x64xf32>
    %90 = arith.addf %88, %89 : vector<8x64xf32>
    %91 = arith.negf %90 : vector<8x64xf32>
    %92 = math.exp %91 : vector<8x64xf32>
    %cst_34 = arith.constant 1.000000e+00 : f32
    %93 = vector.broadcast %cst_34 : f32 to vector<8x64xf32>
    %94 = arith.addf %93, %92 : vector<8x64xf32>
    %95 = arith.divf %93, %94 : vector<8x64xf32>
    %96 = vector.extract_strided_slice %95 {offsets = [0, 0], sizes = [8, 32], strides = [1, 1]} : vector<8x64xf32> to vector<8x32xf32>
    %97 = vector.extract_strided_slice %95 {offsets = [0, 32], sizes = [8, 32], strides = [1, 1]} : vector<8x64xf32> to vector<8x32xf32>
    %98 = vector.extract_strided_slice %87 {offsets = [0, 64], sizes = [8, 32], strides = [1, 1]} : vector<8x96xf32> to vector<8x32xf32>
    %99 = vector.extract_strided_slice %85 {offsets = [0, 64], sizes = [8, 32], strides = [1, 1]} : vector<8x96xf32> to vector<8x32xf32>
    %100 = arith.mulf %96, %99 : vector<8x32xf32>
    %101 = arith.addf %98, %100 : vector<8x32xf32>
    %102 = math.tanh %101 : vector<8x32xf32>
    %cst_35 = arith.constant 1.000000e+00 : f32
    %103 = vector.broadcast %cst_35 : f32 to vector<8x32xf32>
    %104 = arith.subf %103, %97 : vector<8x32xf32>
    %105 = arith.mulf %104, %102 : vector<8x32xf32>
    %106 = arith.mulf %97, %75 : vector<8x32xf32>
    %107 = arith.addf %105, %106 : vector<8x32xf32>
    %108 = arith.index_cast %82 : i32 to index
    %c0_36 = arith.constant 0 : index
    %109 = vector.load %arg8[%108, %c0_36] : memref<64x32xf32, #tpu.memory_space<vmem>>, vector<8x32xf32>
    %110 = arith.addf %107, %109 : vector<8x32xf32>
    %111 = arith.index_cast %82 : i32 to index
    %c0_37 = arith.constant 0 : index
    %112 = vector.load %arg8[%111, %c0_37] : memref<64x32xf32, #tpu.memory_space<vmem>>, vector<8x32xf32>
    tpu.vector_store %arg8[%111, %c0_37], %110 {strides = array<i32>} : memref<64x32xf32, #tpu.memory_space<vmem>>, vector<8x32xf32>,
    %c3_i32 = arith.constant 3 : i32
    %c8_i32_38 = arith.constant 8 : i32
    %113 = arith.muli %c3_i32, %c8_i32_38 : i32
    %114 = tpu.assume_multiple %113, 8 : i32
    %cst_39 = arith.constant dense<0.000000e+00> : vector<8x96xf32>
    %115 = tpu.matmul %107, %13, %cst_39 {dimension_numbers = #tpu.dot_dimension_numbers<[1], [0], [0], [1], [0, 0, 1, 1], [], []>} : vector<8x32xf32>, vector<32x96xf32>, vector<8x96xf32> -> vector<8x96xf32>
    %116 = vector.broadcast %15 : vector<1x96xf32> to vector<8x96xf32>
    %117 = arith.addf %115, %116 : vector<8x96xf32>
    %118 = arith.index_cast %114 : i32 to index
    %c0_40 = arith.constant 0 : index
    %119 = vector.load %arg10[%118, %c0_40] : memref<64x96xf32, #tpu.memory_space<vmem>>, vector<8x96xf32>
    %120 = vector.extract_strided_slice %119 {offsets = [0, 0], sizes = [8, 64], strides = [1, 1]} : vector<8x96xf32> to vector<8x64xf32>
    %121 = vector.extract_strided_slice %117 {offsets = [0, 0], sizes = [8, 64], strides = [1, 1]} : vector<8x96xf32> to vector<8x64xf32>
    %122 = arith.addf %120, %121 : vector<8x64xf32>
    %123 = arith.negf %122 : vector<8x64xf32>
    %124 = math.exp %123 : vector<8x64xf32>
    %cst_41 = arith.constant 1.000000e+00 : f32
    %125 = vector.broadcast %cst_41 : f32 to vector<8x64xf32>
    %126 = arith.addf %125, %124 : vector<8x64xf32>
    %127 = arith.divf %125, %126 : vector<8x64xf32>
    %128 = vector.extract_strided_slice %127 {offsets = [0, 0], sizes = [8, 32], strides = [1, 1]} : vector<8x64xf32> to vector<8x32xf32>
    %129 = vector.extract_strided_slice %127 {offsets = [0, 32], sizes = [8, 32], strides = [1, 1]} : vector<8x64xf32> to vector<8x32xf32>
    %130 = vector.extract_strided_slice %119 {offsets = [0, 64], sizes = [8, 32], strides = [1, 1]} : vector<8x96xf32> to vector<8x32xf32>
    %131 = vector.extract_strided_slice %117 {offsets = [0, 64], sizes = [8, 32], strides = [1, 1]} : vector<8x96xf32> to vector<8x32xf32>
    %132 = arith.mulf %128, %131 : vector<8x32xf32>
    %133 = arith.addf %130, %132 : vector<8x32xf32>
    %134 = math.tanh %133 : vector<8x32xf32>
    %cst_42 = arith.constant 1.000000e+00 : f32
    %135 = vector.broadcast %cst_42 : f32 to vector<8x32xf32>
    %136 = arith.subf %135, %129 : vector<8x32xf32>
    %137 = arith.mulf %136, %134 : vector<8x32xf32>
    %138 = arith.mulf %129, %107 : vector<8x32xf32>
    %139 = arith.addf %137, %138 : vector<8x32xf32>
    %140 = arith.index_cast %114 : i32 to index
    %c0_43 = arith.constant 0 : index
    %141 = vector.load %arg8[%140, %c0_43] : memref<64x32xf32, #tpu.memory_space<vmem>>, vector<8x32xf32>
    %142 = arith.addf %139, %141 : vector<8x32xf32>
    %143 = arith.index_cast %114 : i32 to index
    %c0_44 = arith.constant 0 : index
    %144 = vector.load %arg8[%143, %c0_44] : memref<64x32xf32, #tpu.memory_space<vmem>>, vector<8x32xf32>
    tpu.vector_store %arg8[%143, %c0_44], %142 {strides = array<i32>} : memref<64x32xf32, #tpu.memory_space<vmem>>, vector<8x32xf32>,
    %c4_i32 = arith.constant 4 : i32
    %c8_i32_45 = arith.constant 8 : i32
    %145 = arith.muli %c4_i32, %c8_i32_45 : i32
    %146 = tpu.assume_multiple %145, 8 : i32
    %cst_46 = arith.constant dense<0.000000e+00> : vector<8x96xf32>
    %147 = tpu.matmul %139, %13, %cst_46 {dimension_numbers = #tpu.dot_dimension_numbers<[1], [0], [0], [1], [0, 0, 1, 1], [], []>} : vector<8x32xf32>, vector<32x96xf32>, vector<8x96xf32> -> vector<8x96xf32>
    %148 = vector.broadcast %15 : vector<1x96xf32> to vector<8x96xf32>
    %149 = arith.addf %147, %148 : vector<8x96xf32>
    %150 = arith.index_cast %146 : i32 to index
    %c0_47 = arith.constant 0 : index
    %151 = vector.load %arg10[%150, %c0_47] : memref<64x96xf32, #tpu.memory_space<vmem>>, vector<8x96xf32>
    %152 = vector.extract_strided_slice %151 {offsets = [0, 0], sizes = [8, 64], strides = [1, 1]} : vector<8x96xf32> to vector<8x64xf32>
    %153 = vector.extract_strided_slice %149 {offsets = [0, 0], sizes = [8, 64], strides = [1, 1]} : vector<8x96xf32> to vector<8x64xf32>
    %154 = arith.addf %152, %153 : vector<8x64xf32>
    %155 = arith.negf %154 : vector<8x64xf32>
    %156 = math.exp %155 : vector<8x64xf32>
    %cst_48 = arith.constant 1.000000e+00 : f32
    %157 = vector.broadcast %cst_48 : f32 to vector<8x64xf32>
    %158 = arith.addf %157, %156 : vector<8x64xf32>
    %159 = arith.divf %157, %158 : vector<8x64xf32>
    %160 = vector.extract_strided_slice %159 {offsets = [0, 0], sizes = [8, 32], strides = [1, 1]} : vector<8x64xf32> to vector<8x32xf32>
    %161 = vector.extract_strided_slice %159 {offsets = [0, 32], sizes = [8, 32], strides = [1, 1]} : vector<8x64xf32> to vector<8x32xf32>
    %162 = vector.extract_strided_slice %151 {offsets = [0, 64], sizes = [8, 32], strides = [1, 1]} : vector<8x96xf32> to vector<8x32xf32>
    %163 = vector.extract_strided_slice %149 {offsets = [0, 64], sizes = [8, 32], strides = [1, 1]} : vector<8x96xf32> to vector<8x32xf32>
    %164 = arith.mulf %160, %163 : vector<8x32xf32>
    %165 = arith.addf %162, %164 : vector<8x32xf32>
    %166 = math.tanh %165 : vector<8x32xf32>
    %cst_49 = arith.constant 1.000000e+00 : f32
    %167 = vector.broadcast %cst_49 : f32 to vector<8x32xf32>
    %168 = arith.subf %167, %161 : vector<8x32xf32>
    %169 = arith.mulf %168, %166 : vector<8x32xf32>
    %170 = arith.mulf %161, %139 : vector<8x32xf32>
    %171 = arith.addf %169, %170 : vector<8x32xf32>
    %172 = arith.index_cast %146 : i32 to index
    %c0_50 = arith.constant 0 : index
    %173 = vector.load %arg8[%172, %c0_50] : memref<64x32xf32, #tpu.memory_space<vmem>>, vector<8x32xf32>
    %174 = arith.addf %171, %173 : vector<8x32xf32>
    %175 = arith.index_cast %146 : i32 to index
    %c0_51 = arith.constant 0 : index
    %176 = vector.load %arg8[%175, %c0_51] : memref<64x32xf32, #tpu.memory_space<vmem>>, vector<8x32xf32>
    tpu.vector_store %arg8[%175, %c0_51], %174 {strides = array<i32>} : memref<64x32xf32, #tpu.memory_space<vmem>>, vector<8x32xf32>,
    %c5_i32 = arith.constant 5 : i32
    %c8_i32_52 = arith.constant 8 : i32
    %177 = arith.muli %c5_i32, %c8_i32_52 : i32
    %178 = tpu.assume_multiple %177, 8 : i32
    %cst_53 = arith.constant dense<0.000000e+00> : vector<8x96xf32>
    %179 = tpu.matmul %171, %13, %cst_53 {dimension_numbers = #tpu.dot_dimension_numbers<[1], [0], [0], [1], [0, 0, 1, 1], [], []>} : vector<8x32xf32>, vector<32x96xf32>, vector<8x96xf32> -> vector<8x96xf32>
    %180 = vector.broadcast %15 : vector<1x96xf32> to vector<8x96xf32>
    %181 = arith.addf %179, %180 : vector<8x96xf32>
    %182 = arith.index_cast %178 : i32 to index
    %c0_54 = arith.constant 0 : index
    %183 = vector.load %arg10[%182, %c0_54] : memref<64x96xf32, #tpu.memory_space<vmem>>, vector<8x96xf32>
    %184 = vector.extract_strided_slice %183 {offsets = [0, 0], sizes = [8, 64], strides = [1, 1]} : vector<8x96xf32> to vector<8x64xf32>
    %185 = vector.extract_strided_slice %181 {offsets = [0, 0], sizes = [8, 64], strides = [1, 1]} : vector<8x96xf32> to vector<8x64xf32>
    %186 = arith.addf %184, %185 : vector<8x64xf32>
    %187 = arith.negf %186 : vector<8x64xf32>
    %188 = math.exp %187 : vector<8x64xf32>
    %cst_55 = arith.constant 1.000000e+00 : f32
    %189 = vector.broadcast %cst_55 : f32 to vector<8x64xf32>
    %190 = arith.addf %189, %188 : vector<8x64xf32>
    %191 = arith.divf %189, %190 : vector<8x64xf32>
    %192 = vector.extract_strided_slice %191 {offsets = [0, 0], sizes = [8, 32], strides = [1, 1]} : vector<8x64xf32> to vector<8x32xf32>
    %193 = vector.extract_strided_slice %191 {offsets = [0, 32], sizes = [8, 32], strides = [1, 1]} : vector<8x64xf32> to vector<8x32xf32>
    %194 = vector.extract_strided_slice %183 {offsets = [0, 64], sizes = [8, 32], strides = [1, 1]} : vector<8x96xf32> to vector<8x32xf32>
    %195 = vector.extract_strided_slice %181 {offsets = [0, 64], sizes = [8, 32], strides = [1, 1]} : vector<8x96xf32> to vector<8x32xf32>
    %196 = arith.mulf %192, %195 : vector<8x32xf32>
    %197 = arith.addf %194, %196 : vector<8x32xf32>
    %198 = math.tanh %197 : vector<8x32xf32>
    %cst_56 = arith.constant 1.000000e+00 : f32
    %199 = vector.broadcast %cst_56 : f32 to vector<8x32xf32>
    %200 = arith.subf %199, %193 : vector<8x32xf32>
    %201 = arith.mulf %200, %198 : vector<8x32xf32>
    %202 = arith.mulf %193, %171 : vector<8x32xf32>
    %203 = arith.addf %201, %202 : vector<8x32xf32>
    %204 = arith.index_cast %178 : i32 to index
    %c0_57 = arith.constant 0 : index
    %205 = vector.load %arg8[%204, %c0_57] : memref<64x32xf32, #tpu.memory_space<vmem>>, vector<8x32xf32>
    %206 = arith.addf %203, %205 : vector<8x32xf32>
    %207 = arith.index_cast %178 : i32 to index
    %c0_58 = arith.constant 0 : index
    %208 = vector.load %arg8[%207, %c0_58] : memref<64x32xf32, #tpu.memory_space<vmem>>, vector<8x32xf32>
    tpu.vector_store %arg8[%207, %c0_58], %206 {strides = array<i32>} : memref<64x32xf32, #tpu.memory_space<vmem>>, vector<8x32xf32>,
    %c6_i32 = arith.constant 6 : i32
    %c8_i32_59 = arith.constant 8 : i32
    %209 = arith.muli %c6_i32, %c8_i32_59 : i32
    %210 = tpu.assume_multiple %209, 8 : i32
    %cst_60 = arith.constant dense<0.000000e+00> : vector<8x96xf32>
    %211 = tpu.matmul %203, %13, %cst_60 {dimension_numbers = #tpu.dot_dimension_numbers<[1], [0], [0], [1], [0, 0, 1, 1], [], []>} : vector<8x32xf32>, vector<32x96xf32>, vector<8x96xf32> -> vector<8x96xf32>
    %212 = vector.broadcast %15 : vector<1x96xf32> to vector<8x96xf32>
    %213 = arith.addf %211, %212 : vector<8x96xf32>
    %214 = arith.index_cast %210 : i32 to index
    %c0_61 = arith.constant 0 : index
    %215 = vector.load %arg10[%214, %c0_61] : memref<64x96xf32, #tpu.memory_space<vmem>>, vector<8x96xf32>
    %216 = vector.extract_strided_slice %215 {offsets = [0, 0], sizes = [8, 64], strides = [1, 1]} : vector<8x96xf32> to vector<8x64xf32>
    %217 = vector.extract_strided_slice %213 {offsets = [0, 0], sizes = [8, 64], strides = [1, 1]} : vector<8x96xf32> to vector<8x64xf32>
    %218 = arith.addf %216, %217 : vector<8x64xf32>
    %219 = arith.negf %218 : vector<8x64xf32>
    %220 = math.exp %219 : vector<8x64xf32>
    %cst_62 = arith.constant 1.000000e+00 : f32
    %221 = vector.broadcast %cst_62 : f32 to vector<8x64xf32>
    %222 = arith.addf %221, %220 : vector<8x64xf32>
    %223 = arith.divf %221, %222 : vector<8x64xf32>
    %224 = vector.extract_strided_slice %223 {offsets = [0, 0], sizes = [8, 32], strides = [1, 1]} : vector<8x64xf32> to vector<8x32xf32>
    %225 = vector.extract_strided_slice %223 {offsets = [0, 32], sizes = [8, 32], strides = [1, 1]} : vector<8x64xf32> to vector<8x32xf32>
    %226 = vector.extract_strided_slice %215 {offsets = [0, 64], sizes = [8, 32], strides = [1, 1]} : vector<8x96xf32> to vector<8x32xf32>
    %227 = vector.extract_strided_slice %213 {offsets = [0, 64], sizes = [8, 32], strides = [1, 1]} : vector<8x96xf32> to vector<8x32xf32>
    %228 = arith.mulf %224, %227 : vector<8x32xf32>
    %229 = arith.addf %226, %228 : vector<8x32xf32>
    %230 = math.tanh %229 : vector<8x32xf32>
    %cst_63 = arith.constant 1.000000e+00 : f32
    %231 = vector.broadcast %cst_63 : f32 to vector<8x32xf32>
    %232 = arith.subf %231, %225 : vector<8x32xf32>
    %233 = arith.mulf %232, %230 : vector<8x32xf32>
    %234 = arith.mulf %225, %203 : vector<8x32xf32>
    %235 = arith.addf %233, %234 : vector<8x32xf32>
    %236 = arith.index_cast %210 : i32 to index
    %c0_64 = arith.constant 0 : index
    %237 = vector.load %arg8[%236, %c0_64] : memref<64x32xf32, #tpu.memory_space<vmem>>, vector<8x32xf32>
    %238 = arith.addf %235, %237 : vector<8x32xf32>
    %239 = arith.index_cast %210 : i32 to index
    %c0_65 = arith.constant 0 : index
    %240 = vector.load %arg8[%239, %c0_65] : memref<64x32xf32, #tpu.memory_space<vmem>>, vector<8x32xf32>
    tpu.vector_store %arg8[%239, %c0_65], %238 {strides = array<i32>} : memref<64x32xf32, #tpu.memory_space<vmem>>, vector<8x32xf32>,
    %c7_i32 = arith.constant 7 : i32
    %c8_i32_66 = arith.constant 8 : i32
    %241 = arith.muli %c7_i32, %c8_i32_66 : i32
    %242 = tpu.assume_multiple %241, 8 : i32
    %cst_67 = arith.constant dense<0.000000e+00> : vector<8x96xf32>
    %243 = tpu.matmul %235, %13, %cst_67 {dimension_numbers = #tpu.dot_dimension_numbers<[1], [0], [0], [1], [0, 0, 1, 1], [], []>} : vector<8x32xf32>, vector<32x96xf32>, vector<8x96xf32> -> vector<8x96xf32>
    %244 = vector.broadcast %15 : vector<1x96xf32> to vector<8x96xf32>
    %245 = arith.addf %243, %244 : vector<8x96xf32>
    %246 = arith.index_cast %242 : i32 to index
    %c0_68 = arith.constant 0 : index
    %247 = vector.load %arg10[%246, %c0_68] : memref<64x96xf32, #tpu.memory_space<vmem>>, vector<8x96xf32>
    %248 = vector.extract_strided_slice %247 {offsets = [0, 0], sizes = [8, 64], strides = [1, 1]} : vector<8x96xf32> to vector<8x64xf32>
    %249 = vector.extract_strided_slice %245 {offsets = [0, 0], sizes = [8, 64], strides = [1, 1]} : vector<8x96xf32> to vector<8x64xf32>
    %250 = arith.addf %248, %249 : vector<8x64xf32>
    %251 = arith.negf %250 : vector<8x64xf32>
    %252 = math.exp %251 : vector<8x64xf32>
    %cst_69 = arith.constant 1.000000e+00 : f32
    %253 = vector.broadcast %cst_69 : f32 to vector<8x64xf32>
    %254 = arith.addf %253, %252 : vector<8x64xf32>
    %255 = arith.divf %253, %254 : vector<8x64xf32>
    %256 = vector.extract_strided_slice %255 {offsets = [0, 0], sizes = [8, 32], strides = [1, 1]} : vector<8x64xf32> to vector<8x32xf32>
    %257 = vector.extract_strided_slice %255 {offsets = [0, 32], sizes = [8, 32], strides = [1, 1]} : vector<8x64xf32> to vector<8x32xf32>
    %258 = vector.extract_strided_slice %247 {offsets = [0, 64], sizes = [8, 32], strides = [1, 1]} : vector<8x96xf32> to vector<8x32xf32>
    %259 = vector.extract_strided_slice %245 {offsets = [0, 64], sizes = [8, 32], strides = [1, 1]} : vector<8x96xf32> to vector<8x32xf32>
    %260 = arith.mulf %256, %259 : vector<8x32xf32>
    %261 = arith.addf %258, %260 : vector<8x32xf32>
    %262 = math.tanh %261 : vector<8x32xf32>
    %cst_70 = arith.constant 1.000000e+00 : f32
    %263 = vector.broadcast %cst_70 : f32 to vector<8x32xf32>
    %264 = arith.subf %263, %257 : vector<8x32xf32>
    %265 = arith.mulf %264, %262 : vector<8x32xf32>
    %266 = arith.mulf %257, %235 : vector<8x32xf32>
    %267 = arith.addf %265, %266 : vector<8x32xf32>
    %268 = arith.index_cast %242 : i32 to index
    %c0_71 = arith.constant 0 : index
    %269 = vector.load %arg8[%268, %c0_71] : memref<64x32xf32, #tpu.memory_space<vmem>>, vector<8x32xf32>
    %270 = arith.addf %267, %269 : vector<8x32xf32>
    %271 = arith.index_cast %242 : i32 to index
    %c0_72 = arith.constant 0 : index
    %272 = vector.load %arg8[%271, %c0_72] : memref<64x32xf32, #tpu.memory_space<vmem>>, vector<8x32xf32>
    tpu.vector_store %arg8[%271, %c0_72], %270 {strides = array<i32>} : memref<64x32xf32, #tpu.memory_space<vmem>>, vector<8x32xf32>,
    %c8_i32_73 = arith.constant 8 : i32
    %c0_74 = arith.constant 0 : index
    %c0_75 = arith.constant 0 : index
    %c0_76 = arith.constant 0 : index
    %273 = vector.load %arg9[%c0_74, %c0_75, %c0_76] : memref<1x8x32xf32, #tpu.memory_space<vmem>>, vector<1x8x32xf32>
    %274 = vector.shape_cast %273 : vector<1x8x32xf32> to vector<8x32xf32>
    %275 = vector.shape_cast %267 : vector<8x32xf32> to vector<1x8x32xf32>
    tpu.vector_store %arg9[%c0_74, %c0_75, %c0_76], %275 {strides = array<i32>} : memref<1x8x32xf32, #tpu.memory_space<vmem>>, vector<1x8x32xf32>,
    %c0_77 = arith.constant 0 : index
    %c0_78 = arith.constant 0 : index
    %276 = vector.load %arg8[%c0_77, %c0_78] : memref<64x32xf32, #tpu.memory_space<vmem>>, vector<64x32xf32>
    %cst_79 = arith.constant dense<0.000000e+00> : vector<64xf32>
    %277 = vector.multi_reduction <add>, %276, %cst_79 [1] : vector<64x32xf32> to vector<64xf32>
    %278 = vector.shape_cast %277 : vector<64xf32> to vector<64x1xf32>
    %cst_80 = arith.constant 3.200000e+01 : f32
    %279 = vector.broadcast %cst_80 : f32 to vector<64x1xf32>
    %280 = arith.divf %278, %279 : vector<64x1xf32>
    %281 = vector.broadcast %280 : vector<64x1xf32> to vector<64x32xf32>
    %282 = arith.subf %276, %281 : vector<64x32xf32>
    %283 = arith.mulf %282, %282 : vector<64x32xf32>
    %cst_81 = arith.constant dense<0.000000e+00> : vector<64xf32>
    %284 = vector.multi_reduction <add>, %283, %cst_81 [1] : vector<64x32xf32> to vector<64xf32>
    %285 = vector.shape_cast %284 : vector<64xf32> to vector<64x1xf32>
    %cst_82 = arith.constant 3.200000e+01 : f32
    %286 = vector.broadcast %cst_82 : f32 to vector<64x1xf32>
    %287 = arith.divf %285, %286 : vector<64x1xf32>
    %288 = vector.broadcast %280 : vector<64x1xf32> to vector<64x32xf32>
    %289 = arith.subf %276, %288 : vector<64x32xf32>
    %cst_83 = arith.constant 9.99999974E-6 : f32
    %290 = vector.broadcast %cst_83 : f32 to vector<64x1xf32>
    %291 = arith.addf %287, %290 : vector<64x1xf32>
    %292 = math.rsqrt %291 : vector<64x1xf32>
    %293 = vector.broadcast %292 : vector<64x1xf32> to vector<64x32xf32>
    %294 = arith.mulf %289, %293 : vector<64x32xf32>
    %c0_84 = arith.constant 0 : index
    %c0_85 = arith.constant 0 : index
    %c0_86 = arith.constant 0 : index
    %295 = vector.load %arg6[%c0_84, %c0_85, %c0_86] : memref<1x1x32xf32, #tpu.memory_space<vmem>>, vector<1x1x32xf32>
    %296 = vector.shape_cast %295 : vector<1x1x32xf32> to vector<1x32xf32>
    %297 = vector.broadcast %296 : vector<1x32xf32> to vector<64x32xf32>
    %298 = arith.mulf %294, %297 : vector<64x32xf32>
    %c0_87 = arith.constant 0 : index
    %c0_88 = arith.constant 0 : index
    %c0_89 = arith.constant 0 : index
    %299 = vector.load %arg7[%c0_87, %c0_88, %c0_89] : memref<1x1x32xf32, #tpu.memory_space<vmem>>, vector<1x1x32xf32>
    %300 = vector.shape_cast %299 : vector<1x1x32xf32> to vector<1x32xf32>
    %301 = vector.broadcast %300 : vector<1x32xf32> to vector<64x32xf32>
    %302 = arith.addf %298, %301 : vector<64x32xf32>
    %c0_90 = arith.constant 0 : index
    %c0_91 = arith.constant 0 : index
    %303 = vector.load %arg8[%c0_90, %c0_91] : memref<64x32xf32, #tpu.memory_space<vmem>>, vector<64x32xf32>
    tpu.vector_store %arg8[%c0_90, %c0_91], %302 {strides = array<i32>} : memref<64x32xf32, #tpu.memory_space<vmem>>, vector<64x32xf32>,
    return
  }
  func.func @transform_1(%arg0: i32) -> (i32, i32, i32) {
    %c0_i32 = arith.constant 0 : i32
    %c0_i32_0 = arith.constant 0 : i32
    %c0_i32_1 = arith.constant 0 : i32
    return %arg0, %c0_i32, %c0_i32_0 : i32, i32, i32
  }
  func.func @transform_2(%arg0: i32) -> (i32, i32, i32) {
    %c0_i32 = arith.constant 0 : i32
    %c0_i32_0 = arith.constant 0 : i32
    %c0_i32_1 = arith.constant 0 : i32
    return %arg0, %c0_i32, %c0_i32_0 : i32, i32, i32
  }
  func.func @transform_3(%arg0: i32) -> (i32, i32, i32) {
    %c0_i32 = arith.constant 0 : i32
    %c0_i32_0 = arith.constant 0 : i32
    %c0_i32_1 = arith.constant 0 : i32
    return %arg0, %c0_i32, %c0_i32_0 : i32, i32, i32
  }
  func.func @transform_4(%arg0: i32) -> (i32, i32, i32) {
    %c0_i32 = arith.constant 0 : i32
    %c0_i32_0 = arith.constant 0 : i32
    %c0_i32_1 = arith.constant 0 : i32
    return %arg0, %c0_i32, %c0_i32_0 : i32, i32, i32
  }
  func.func @transform_5(%arg0: i32) -> (i32, i32, i32) {
    %c0_i32 = arith.constant 0 : i32
    %c0_i32_0 = arith.constant 0 : i32
    %c0_i32_1 = arith.constant 0 : i32
    return %arg0, %c0_i32, %c0_i32_0 : i32, i32, i32
  }
  func.func @transform_6(%arg0: i32) -> (i32, i32, i32) {
    %c0_i32 = arith.constant 0 : i32
    %c0_i32_0 = arith.constant 0 : i32
    %c0_i32_1 = arith.constant 0 : i32
    return %arg0, %c0_i32, %c0_i32_0 : i32, i32, i32
  }
  func.func @transform_7(%arg0: i32) -> (i32, i32) {
    %c0_i32 = arith.constant 0 : i32
    %c0_i32_0 = arith.constant 0 : i32
    %c0_i32_1 = arith.constant 0 : i32
    return %c0_i32, %c0_i32_0 : i32, i32
  }
  func.func @transform_8(%arg0: i32) -> (i32, i32, i32) {
    %c0_i32 = arith.constant 0 : i32
    %c0_i32_0 = arith.constant 0 : i32
    %c0_i32_1 = arith.constant 0 : i32
    return %arg0, %c0_i32, %c0_i32_0 : i32, i32, i32
  }
}

</mosaic_0001>

<bundles_post_ra>
// kernel: residual_gru_forward.1
= control target key start
LH: loop header
LB: loop body
LE: loop exit
PB: predicated region body
PF: predicated region fallthrough
CT: control target
= control target key end

     0   :  { %s2182_s27 = smov 0   ;;  %s2704_s0 = inlined_call_operand.vmem [shape: f32[64,32], index: 0, kind: input, shape index: {}, may-alias: {0,7}]   ;;  %s2705_s1 = inlined_call_operand.vmem [shape: f32[2,32,96], index: 1, kind: input, shape index: {}]   ;;  %s2706_s2 = inlined_call_operand.vmem [shape: f32[2,32,96], index: 2, kind: input, shape index: {}]   ;;  %s2707_s3 = inlined_call_operand.vmem [shape: f32[2,1,96], index: 3, kind: input, shape index: {}]   ;;  %s2708_s4 = inlined_call_operand.vmem [shape: f32[2,1,96], index: 4, kind: input, shape index: {}]   ;;  %s2709_s5 = inlined_call_operand.vmem [shape: f32[2,1,32], index: 5, kind: input, shape index: {}]   ;;  %s2710_s6 = inlined_call_operand.vmem [shape: f32[2,1,32], index: 6, kind: input, shape index: {}]   ;;  %s2711_s7 = inlined_call_operand.vmem [shape: f32[64,32], index: 7, kind: output, shape index: {0}, may-alias: {0,7}]   ;;  %s2712_s8 = inlined_call_operand.vmem [shape: f32[2,8,32], index: 8, kind: output, shape index: {1}]  }
   0x1 LB: > { %s1771_s28 = sadd.s32 4294967295, %s2129_s27   ;;  %p1775_p0 = scmp.ge.s32.totalorder %s2129_s27, 1  ;;  %s2129_s27 = sphi %s2182_s27, %s19_s27  }
   0x2   : > { %p278_p1 = scmp.lt.s32.totalorder %s2129_s27, 3 }
   0x4   : > { %p279_p2 = pnand %p1775_p0, %p278_p1 }
   0x5   : > { %p326_p3 = scmp.lt.s32.totalorder (!%p279_p2), %s1771_s28, 1  ;;  %p1781_p4 = scmp.ne.s32.totalorder (!%p279_p2), %s1771_s28, 0 }
   0x6   : > { %282 = sbr.rel (%p279_p2) target bundleno = 5923 (0x1723), region = 44 }
   0xd   : > { %s2190_s29 = scalar_select %p326_p3, %s1771_s28, 1 }
   0xe   : > { %355 = sbr.rel (%p1781_p4) target bundleno = 44 (0x2c), region = 48 }
   0xf   : > { %s1825_s30 = sshll.u32 %s2190_s29, 5  ;;  %s338_s11 = scalar_lea.vmem %s2707_s3, %s2190_s29 }
  0x10   : > { %s2200_s14 = scalar_lea.vmem %s2705_s1, %s1825_s30  ;;  %s2205_s17 = scalar_lea.vmem %s2706_s2, %s1825_s30 }
  0x11   : > { %s341_s20 = scalar_lea.vmem %s2708_s4, %s2190_s29  ;;  %s344_s23 = scalar_lea.vmem %s2709_s5, %s2190_s29 }
  0x12   : > { %s347_s26 = scalar_lea.vmem %s2710_s6, %s2190_s29  ;;  %s1780_s9 = sshll.u32 %s2190_s29, 3 }
  0x13   : > { %s2223_s13 = scalar_lea.vmem %s2712_s8, %s1780_s9 }
  0x15   : > { %v388_v0 = vld [vmem:[%s2704_s0] sm:$0xff]  ;;  %v390_v1 = vld [vmem:[%s2704_s0 + $0x8] sm:$0xff]  ;;  %v392_v2 = vld [vmem:[%s2704_s0 + $0x10] sm:$0xff] }
  0x16   : > { %389 = vst [vmem:[%s2711_s7] sm:$0xff] %v388_v0  ;;  %391 = vst [vmem:[%s2711_s7 + $0x8] sm:$0xff] %v390_v1 }
  0x17   : > { %393 = vst [vmem:[%s2711_s7 + $0x10] sm:$0xff] %v392_v2 }
  0x1e   : > { %v394_v3 = vld [vmem:[%s2704_s0 + $0x18] sm:$0xff]  ;;  %v396_v4 = vld [vmem:[%s2704_s0 + $0x20] sm:$0xff]  ;;  %v398_v5 = vld [vmem:[%s2704_s0 + $0x28] sm:$0xff] }
  0x1f   : > { %395 = vst [vmem:[%s2711_s7 + $0x18] sm:$0xff] %v394_v3  ;;  %397 = vst [vmem:[%s2711_s7 + $0x20] sm:$0xff] %v396_v4 }
  0x20   : > { %399 = vst [vmem:[%s2711_s7 + $0x28] sm:$0xff] %v398_v5 }
  0x27   : > { %v400_v6 = vld [vmem:[%s2704_s0 + $0x30] sm:$0xff]  ;;  %v402_v7 = vld [vmem:[%s2704_s0 + $0x38] sm:$0xff] }
  0x28   : > { %401 = vst [vmem:[%s2711_s7 + $0x30] sm:$0xff] %v400_v6  ;;  %403 = vst [vmem:[%s2711_s7 + $0x38] sm:$0xff] %v402_v7 }
  0x29   : > { %411 = vsyncadd [#allocation3], 1024 }
  0x2a   : > { %2125 = dma.done.wait [#allocation3], 1024 }
  0x2b   : > { %2126 = vsyncadd [#allocation3], 4294966272 }
  0x2c PF: > { %v423_v8 = vld [vmem:[%s2200_s14] sm:$0xff]  ;;  %v424_v9 = vld [vmem:[%s2200_s14 + $0x8] sm:$0xff]  ;;  %v2131_v11 = vmov 0.0|0.0   ;;  %v425_v14 = vld [vmem:[%s2200_s14 + $0x10] sm:$0xff]  ;;  %vm2132_vm0 = vmmov 0   ;;  %v2133_v16 = vmov 0.0  }
  0x2d   : > { %v573_v10 = vld [vmem:[%s2205_s17] sm:$0xff]  ;;  %1995 = vmatprep.subr.bf16.mxu1 %v2131_v11  ;;  %v1987_v12 = vpack.c.bf16 %v424_v9, %v423_v8  ;;  %v574_v13 = vld [vmem:[%s2205_s17 + $0x8] sm:$0xff]  ;;  %v426_v15 = vld [vmem:[%s2200_s14 + $0x18] sm:$0xff]  ;;  %1907 = vmatprep.mubr.msk.f32.mxu1 %vm2132_vm0, %v2133_v16  ;;  %vm434_vm1 = vcmask 261120   ;;  %vm564_vm2 = vcmask 785408   ;;  %s2136_s9 = smov 32  }
  0x2e   : > { %v2282_v17 = vpack.c.bf16 %v574_v13, %v573_v10  ;;  %v1991_v18 = vpack.c.bf16 %v426_v15, %v425_v14  ;;  %v575_v19 = vld [vmem:[%s2205_s17 + $0x10] sm:$0xff]  ;;  %v576_v20 = vld [vmem:[%s2205_s17 + $0x18] sm:$0xff]  ;;  %v2289_v21 = vld [vmem:[%s2711_s7] sm:$0xff] }
  0x2f   : > { %1988 = vmatprep.subr.bf16.mxu0 %v1987_v12  ;;  %1887 = vmatprep.mubr.msk.f32.mxu0 %vm434_vm1, %v2289_v21  ;;  %v2294_v22 = vpack.c.bf16 %v576_v20, %v575_v19  ;;  %v2301_v23 = vld [vmem:[%s2711_s7 + $0x8] sm:$0xff]  ;;  %v2323_v24 = vld [vmem:[%s341_s20] ss:$0 sm:$0xff]  ;;  %s2134_s20 = smov 64   ;;  %v2357_v63 = vld [vmem:[%s2711_s7 + $0x10] sm:$0xff] }
  0x30   : > { %1997 = vmatpush3.bf16.msra.mxu1 %v2282_v17  ;;  %1990 = vmatpush3.bf16.msra.mxu0 %v1987_v12  ;;  %v2330_v25 = vld [vmem:[%s338_s11] ss:$0 sm:$0xff]  ;;  %s2135_s11 = smov 96   ;;  %v2362_v0 = vld [vmem:[%s2711_s7 + $0x18] sm:$0xff]  ;;  %v2378_v2 = vld [vmem:[%s2711_s7 + $0x28] sm:$0xff] }
  0x31   : > { %1998 = vmatprep.subr.bf16.mxu1 %v2131_v11  ;;  %1992 = vmatprep.subr.bf16.mxu0 %v1991_v18  ;;  %v2367_v1 = vld [vmem:[%s2711_s7 + $0x20] sm:$0xff]  ;;  %v2383_v3 = vld [vmem:[%s2711_s7 + $0x30] sm:$0xff]  ;;  %v2392_v4 = vld [vmem:[%s2711_s7 + $0x38] sm:$0xff] }
  0x34   : > { %2000 = vmatpush3.bf16.msra.mxu1 %v2294_v22  ;;  %1994 = vmatpush3.bf16.msra.mxu0 %v1991_v18 }
  0x35   : > { %2001 = vmatprep.subr.bf16.mxu1 %v2131_v11  ;;  %2007 = vmatprep.subr.bf16.mxu0 %v2131_v11 }
  0x37   : > { %1908 = vmatmul.mubr.f32.vlgmr.msra.gmra.mrb[0].mxu1 %v2133_v16  ;;  %1888 = vmatmul.mubr.msk.f32.vlgmr.msra.gmra.mrb[0].mxu0 %vm434_vm1, %v2301_v23 }
  0x38   : > { %2003 = vmatpush3.bf16.msra.mxu1 %v2282_v17  ;;  %1918 = vmatprep.mubr.msk.f32.mxu1 %vm2132_vm0, %v2133_v16 }
  0x39   : > { %2004 = vmatprep.subr.bf16.mxu1 %v2131_v11  ;;  %2009 = vmatpush3.bf16.msra.mxu0 %v2282_v17 }
  0x3a   : > { %2010 = vmatprep.subr.bf16.mxu0 %v2131_v11  ;;  %1890 = vmatprep.mubr.msk.f32.mxu0 %vm434_vm1, %v2357_v63 }
  0x3b   : > { %1891 = vmatmul.mubr.msk.f32.gmra.mrb[2].mxu0 %vm434_vm1, %v2362_v0 }
  0x3c   : > { %2006 = vmatpush3.bf16.msra.mxu1 %v2294_v22  ;;  %1893 = vmatprep.mubr.msk.f32.mxu0 %vm434_vm1, %v2367_v1 }
  0x3d   : > { %2012 = vmatpush3.bf16.msra.mxu0 %v2294_v22  ;;  %2013 = vmatprep.subr.bf16.mxu1 %v2131_v11 }
  0x3e   : > { %2019 = vmatprep.subr.bf16.mxu0 %v2131_v11 }
  0x3f   : > { %1894 = vmatmul.mubr.msk.f32.gmra.mrb[4].mxu0 %vm434_vm1, %v2378_v2 }
  0x40   : > { %1896 = vmatprep.mubr.msk.f32.mxu0 %vm434_vm1, %v2383_v3 }
  0x43   : > { %1897 = vmatmul.mubr.msk.f32.gmra.mrb[6].mxu0 %vm434_vm1, %v2392_v4 }
  0x44   : > { %1929 = vmatprep.mubr.msk.f32.mxu0 %vm2132_vm0, %v2133_v16 }
 0x10a   : > { %v653_v26 = vpop.f32.mrb[0].mxu1  ;;  %v1889_v27 = vpop.f32.mrb[0].mxu0 }
 0x10b   : > { %v654_v28 = vadd.f32 %v2323_v24, %v653_v26  ;;  %v531_v29 = vadd.f32 %v1889_v27, %v2330_v25  ;;  %v1909_v30 = vpop.f32.mrb[1].mxu1  ;;  %v525_v31 = vpop.f32.mrb[1].mxu0 }
 0x10c   : > { %v526_v32 = vadd.f32 %v2330_v25, %v525_v31 }
 0x10d   : > { %566 = vst.msk [vmem:[#allocation2 + $0x8] sm:$0xff] %vm564_vm2, %v531_v29  ;;  %666 = vrot.lane.b32.xlu0 %v654_v28, %s2134_s20 }
 0x10e   : > { %565 = vst.msk [vmem:[#allocation2] sm:$0xff] %vm564_vm2, %v526_v32  ;;  %v1892_v12 = vpop.f32.mrb[2].mxu0 }
 0x10f   : > { %v541_v13 = vadd.f32 %v1892_v12, %v2330_v25  ;;  %v535_v14 = vpop.f32.mrb[3].mxu0 }
 0x110   : > { %v536_v15 = vadd.f32 %v2330_v25, %v535_v14 }
 0x111   : > { %568 = vst.msk [vmem:[#allocation2 + $0x18] sm:$0xff] %vm564_vm2, %v541_v13 }
 0x112   : > { %567 = vst.msk [vmem:[#allocation2 + $0x10] sm:$0xff] %vm564_vm2, %v536_v15  ;;  %v1895_v18 = vpop.f32.mrb[4].mxu0 }
 0x113   : > { %v551_v19 = vadd.f32 %v1895_v18, %v2330_v25  ;;  %v545_v20 = vpop.f32.mrb[5].mxu0 }
 0x114   : > { %v771_v53 = vld [vmem:[#allocation2 + $0x8] sm:$0xff]  ;;  %v546_v26 = vadd.f32 %v2330_v25, %v545_v20 }
 0x115   : > { %v657_v33 = vld [vmem:[#allocation2] sm:$0xff]  ;;  %570 = vst.msk [vmem:[#allocation2 + $0x28] sm:$0xff] %vm564_vm2, %v551_v19 }
 0x116   : > { %v658_v34 = vadd.f32 %v657_v33, %v654_v28  ;;  %569 = vst.msk [vmem:[#allocation2 + $0x20] sm:$0xff] %vm564_vm2, %v546_v26  ;;  %v1898_v27 = vpop.f32.mrb[6].mxu0 }
 0x117   : > { %v561_v28 = vadd.f32 %v1898_v27, %v2330_v25  ;;  %v555_v29 = vpop.f32.mrb[7].mxu0 }
 0x118   : > { %v1792_v35 = vmul.f32 -1.442695, %v658_v34  ;;  %v556_v30 = vadd.f32 %v2330_v25, %v555_v29 }
 0x119   : > { %572 = vst.msk [vmem:[#allocation2 + $0x38] sm:$0xff] %vm564_vm2, %v561_v28  ;;  %v886_v34 = vld [vmem:[#allocation2 + $0x10] sm:$0xff] }
 0x11a   : > { %2057 = vpow2.f32 %v1792_v35  ;;  %571 = vst.msk [vmem:[#allocation2 + $0x30] sm:$0xff] %vm564_vm2, %v556_v30 }
 0x11d   : > { %v1116_v26 = vld [vmem:[#allocation2 + $0x20] sm:$0xff] }
 0x124   : > { %v2058_v36 = vpop.eup %2057 }
 0x125   : > { %v662_v37 = vadd.f32 1.0, %v2058_v36 }
 0x127   : > { %2059 = vrcp.f32 %v662_v37 }
 0x131   : > { %v2060_v38 = vpop.eup %2059 }
 0x132   : > { %v676_v44 = vsub.f32 1.0, %v2060_v38  ;;  %v682_v46 = vmul.f32 0.0, %v2060_v38 }
 0x17f   : > { %v667_v39 = vpop.permute.xlu0 %666 }
 0x180   : > { %v669_v40 = vmul.f32 %v2060_v38, %v667_v39 }
 0x182   : > { %671 = vrot.lane.b32.xlu0 %v669_v40, %s2134_s20 }
 0x1f4   : > { %v672_v41 = vpop.permute.xlu0 %671 }
 0x1f5   : > { %v674_v42 = vadd.f32 %v672_v41, %v657_v33 }
 0x1f7   : > { %2061 = vtanh.f32 %v674_v42 }
 0x201   : > { %v2062_v43 = vpop.eup %2061 }
 0x202   : > { %678 = vrot.lane.b32.xlu1 %v2062_v43, %s2135_s11 }
 0x274   : > { %v679_v45 = vpop.permute.xlu1 %678 }
 0x275   : > { %v681_v47 = vmul.f32 %v679_v45, %v676_v44 }
 0x277   : > { %v2340_v48 = vadd.f32 %v682_v46, %v681_v47 }
 0x279   : > { %696 = vrot.lane.b32.xlu1 %v2340_v48, %s2135_s11 }
 0x2eb   : > { %v697_v49 = vpop.permute.xlu1 %696 }
 0x2ec   : > { %1919 = vmatmul.mubr.msk.f32.vlgmr.msra.gmra.mrb[2].mxu1 %vm434_vm1, %v697_v49 }
 0x2ed   : > { %2015 = vmatpush3.bf16.msra.mxu1 %v2282_v17  ;;  %1940 = vmatprep.mubr.msk.f32.mxu1 %vm2132_vm0, %v2133_v16 }
 0x2ee   : > { %2016 = vmatprep.subr.bf16.mxu1 %v2131_v11 }
 0x2f1   : > { %2018 = vmatpush3.bf16.msra.mxu1 %v2294_v22 }
 0x2f2   : > { %2025 = vmatprep.subr.bf16.mxu1 %v2131_v11 }
 0x3bf   : > { %v766_v50 = vpop.f32.mrb[2].mxu1 }
 0x3c0   : > { %v767_v51 = vadd.f32 %v2323_v24, %v766_v50  ;;  %v1920_v52 = vpop.f32.mrb[3].mxu1 }
 0x3c2   : > { %780 = vrot.lane.b32.xlu0 %v767_v51, %s2134_s20  ;;  %v772_v54 = vadd.f32 %v771_v53, %v767_v51 }
 0x3c4   : > { %v1794_v55 = vmul.f32 -1.442695, %v772_v54 }
 0x3c6   : > { %2063 = vpow2.f32 %v1794_v55  ;;  %v1001_v55 = vld [vmem:[#allocation2 + $0x18] sm:$0xff] }
 0x3d0   : > { %v2064_v56 = vpop.eup %2063 }
 0x3d1   : > { %v776_v57 = vadd.f32 1.0, %v2064_v56 }
 0x3d3   : > { %2065 = vrcp.f32 %v776_v57 }
 0x3dd   : > { %v2066_v58 = vpop.eup %2065 }
 0x3de   : > { %v790_v6 = vsub.f32 1.0, %v2066_v58  ;;  %v796_v8 = vmul.f32 %v2066_v58, %v2340_v48 }
 0x434   : > { %v781_v59 = vpop.permute.xlu0 %780 }
 0x435   : > { %v783_v60 = vmul.f32 %v2066_v58, %v781_v59 }
 0x437   : > { %785 = vrot.lane.b32.xlu1 %v783_v60, %s2134_s20 }
 0x4a9   : > { %v786_v61 = vpop.permute.xlu1 %785 }
 0x4aa   : > { %v788_v62 = vadd.f32 %v786_v61, %v771_v53 }
 0x4ac   : > { %2067 = vtanh.f32 %v788_v62 }
 0x4b6   : > { %v2068_v5 = vpop.eup %2067 }
 0x4b7   : > { %792 = vrot.lane.b32.xlu0 %v2068_v5, %s2135_s11 }
 0x529   : > { %v793_v7 = vpop.permute.xlu0 %792 }
 0x52a   : > { %v795_v9 = vmul.f32 %v793_v7, %v790_v6 }
 0x52c   : > { %v2400_v10 = vadd.f32 %v796_v8, %v795_v9 }
 0x52e   : > { %811 = vrot.lane.b32.xlu1 %v2400_v10, %s2135_s11 }
 0x5a0   : > { %v812_v31 = vpop.permute.xlu1 %811 }
 0x5a1   : > { %1930 = vmatmul.mubr.msk.f32.vlgmr.msra.gmra.mrb[8].mxu0 %vm434_vm1, %v812_v31 }
 0x5a2   : > { %2021 = vmatpush3.bf16.msra.mxu0 %v2282_v17  ;;  %1951 = vmatprep.mubr.msk.f32.mxu0 %vm2132_vm0, %v2133_v16 }
 0x5a3   : > { %2022 = vmatprep.subr.bf16.mxu0 %v2131_v11 }
 0x5a6   : > { %2024 = vmatpush3.bf16.msra.mxu0 %v2294_v22 }
 0x5a7   : > { %2031 = vmatprep.subr.bf16.mxu0 %v2131_v11 }
 0x674   : > { %v881_v32 = vpop.f32.mrb[8].mxu0 }
 0x675   : > { %v882_v25 = vadd.f32 %v2323_v24, %v881_v32  ;;  %v1931_v33 = vpop.f32.mrb[9].mxu0 }
 0x677   : > { %895 = vrot.lane.b32.xlu0 %v882_v25, %s2134_s20  ;;  %v887_v35 = vadd.f32 %v886_v34, %v882_v25 }
 0x679   : > { %v1798_v36 = vmul.f32 -1.442695, %v887_v35 }
 0x67b   : > { %2069 = vpow2.f32 %v1798_v36 }
 0x685   : > { %v2070_v37 = vpop.eup %2069 }
 0x686   : > { %v891_v38 = vadd.f32 1.0, %v2070_v37 }
 0x688   : > { %2071 = vrcp.f32 %v891_v38 }
 0x692   : > { %v2072_v39 = vpop.eup %2071 }
 0x693   : > { %v905_v45 = vsub.f32 1.0, %v2072_v39  ;;  %v911_v47 = vmul.f32 %v2072_v39, %v2400_v10 }
 0x6e9   : > { %v896_v40 = vpop.permute.xlu0 %895 }
 0x6ea   : > { %v898_v41 = vmul.f32 %v2072_v39, %v896_v40 }
 0x6ec   : > { %900 = vrot.lane.b32.xlu1 %v898_v41, %s2134_s20 }
 0x75e   : > { %v901_v42 = vpop.permute.xlu1 %900 }
 0x75f   : > { %v903_v43 = vadd.f32 %v901_v42, %v886_v34 }
 0x761   : > { %2073 = vtanh.f32 %v903_v43 }
 0x76b   : > { %v2074_v44 = vpop.eup %2073 }
 0x76c   : > { %907 = vrot.lane.b32.xlu0 %v2074_v44, %s2135_s11 }
 0x7de   : > { %v908_v46 = vpop.permute.xlu0 %907 }
 0x7df   : > { %v910_v49 = vmul.f32 %v908_v46, %v905_v45  ;;  %v1231_v45 = vld [vmem:[#allocation2 + $0x28] sm:$0xff] }
 0x7e1   : > { %v2428_v50 = vadd.f32 %v911_v47, %v910_v49 }
 0x7e3   : > { %926 = vrot.lane.b32.xlu1 %v2428_v50, %s2135_s11 }
 0x855   : > { %v927_v51 = vpop.permute.xlu1 %926 }
 0x856   : > { %1941 = vmatmul.mubr.msk.f32.vlgmr.msra.gmra.mrb[4].mxu1 %vm434_vm1, %v927_v51 }
 0x857   : > { %2027 = vmatpush3.bf16.msra.mxu1 %v2282_v17  ;;  %1962 = vmatprep.mubr.msk.f32.mxu1 %vm2132_vm0, %v2133_v16 }
 0x858   : > { %2028 = vmatprep.subr.bf16.mxu1 %v2131_v11 }
 0x85b   : > { %2030 = vmatpush3.bf16.msra.mxu1 %v2294_v22 }
 0x85c   : > { %2037 = vmatprep.subr.bf16.mxu1 %v2131_v11 }
 0x929   : > { %v996_v52 = vpop.f32.mrb[4].mxu1 }
 0x92a   : > { %v997_v53 = vadd.f32 %v2323_v24, %v996_v52  ;;  %v1942_v54 = vpop.f32.mrb[5].mxu1 }
 0x92c   : > { %1010 = vrot.lane.b32.xlu0 %v997_v53, %s2134_s20  ;;  %v1002_v56 = vadd.f32 %v1001_v55, %v997_v53 }
 0x92e   : > { %v1802_v57 = vmul.f32 -1.442695, %v1002_v56 }
 0x930   : > { %2075 = vpow2.f32 %v1802_v57 }
 0x93a   : > { %v2076_v58 = vpop.eup %2075 }
 0x93b   : > { %v1006_v59 = vadd.f32 1.0, %v2076_v58 }
 0x93d   : > { %2077 = vrcp.f32 %v1006_v59 }
 0x947   : > { %v2078_v60 = vpop.eup %2077 }
 0x948   : > { %v1020_v8 = vsub.f32 1.0, %v2078_v60  ;;  %v1026_v12 = vmul.f32 %v2078_v60, %v2428_v50 }
 0x99e   : > { %v1011_v61 = vpop.permute.xlu0 %1010 }
 0x99f   : > { %v1013_v62 = vmul.f32 %v2078_v60, %v1011_v61 }
 0x9a1   : > { %1015 = vrot.lane.b32.xlu1 %v1013_v62, %s2134_s20 }
 0xa13   : > { %v1016_v5 = vpop.permute.xlu1 %1015 }
 0xa14   : > { %v1018_v6 = vadd.f32 %v1016_v5, %v1001_v55  ;;  %v1346_v5 = vld [vmem:[#allocation2 + $0x30] sm:$0xff] }
 0xa16   : > { %2079 = vtanh.f32 %v1018_v6 }
 0xa20   : > { %v2080_v7 = vpop.eup %2079 }
 0xa21   : > { %1022 = vrot.lane.b32.xlu0 %v2080_v7, %s2135_s11 }
 0xa93   : > { %v1023_v9 = vpop.permute.xlu0 %1022 }
 0xa94   : > { %v1025_v13 = vmul.f32 %v1023_v9, %v1020_v8 }
 0xa96   : > { %v2444_v14 = vadd.f32 %v1026_v12, %v1025_v13 }
 0xa98   : > { %1041 = vrot.lane.b32.xlu1 %v2444_v14, %s2135_s11 }
 0xb0a   : > { %v1042_v15 = vpop.permute.xlu1 %1041 }
 0xb0b   : > { %1952 = vmatmul.mubr.msk.f32.vlgmr.msra.gmra.mrb[10].mxu0 %vm434_vm1, %v1042_v15 }
 0xb0c   : > { %2033 = vmatpush3.bf16.msra.mxu0 %v2282_v17  ;;  %1973 = vmatprep.mubr.msk.f32.mxu0 %vm2132_vm0, %v2133_v16 }
 0xb0d   : > { %2034 = vmatprep.subr.bf16.mxu0 %v2131_v11 }
 0xb10   : > { %2036 = vmatpush3.bf16.msra.mxu0 %v2294_v22 }
 0xbde   : > { %v1111_v18 = vpop.f32.mrb[10].mxu0 }
 0xbdf   : > { %v1112_v19 = vadd.f32 %v2323_v24, %v1111_v18  ;;  %v1953_v20 = vpop.f32.mrb[11].mxu0 }
 0xbe1   : > { %1125 = vrot.lane.b32.xlu0 %v1112_v19, %s2134_s20  ;;  %v1117_v27 = vadd.f32 %v1116_v26, %v1112_v19 }
 0xbe3   : > { %v1806_v28 = vmul.f32 -1.442695, %v1117_v27 }
 0xbe5   : > { %2081 = vpow2.f32 %v1806_v28 }
 0xbef   : > { %v2082_v29 = vpop.eup %2081 }
 0xbf0   : > { %v1121_v30 = vadd.f32 1.0, %v2082_v29 }
 0xbf2   : > { %2083 = vrcp.f32 %v1121_v30 }
 0xbfc   : > { %v2084_v31 = vpop.eup %2083 }
 0xbfd   : > { %v1135_v36 = vsub.f32 1.0, %v2084_v31  ;;  %v1141_v38 = vmul.f32 %v2084_v31, %v2444_v14 }
 0xc53   : > { %v1126_v32 = vpop.permute.xlu0 %1125 }
 0xc54   : > { %v1128_v25 = vmul.f32 %v2084_v31, %v1126_v32 }
 0xc56   : > { %1130 = vrot.lane.b32.xlu1 %v1128_v25, %s2134_s20 }
 0xcc8   : > { %v1131_v33 = vpop.permute.xlu1 %1130 }
 0xcc9   : > { %v1133_v34 = vadd.f32 %v1131_v33, %v1116_v26 }
 0xccb   : > { %2085 = vtanh.f32 %v1133_v34  ;;  %v1461_v34 = vld [vmem:[#allocation2 + $0x38] sm:$0xff] }
 0xcd5   : > { %v2086_v35 = vpop.eup %2085 }
 0xcd6   : > { %1137 = vrot.lane.b32.xlu0 %v2086_v35, %s2135_s11 }
 0xd48   : > { %v1138_v37 = vpop.permute.xlu0 %1137 }
 0xd49   : > { %v1140_v39 = vmul.f32 %v1138_v37, %v1135_v36 }
 0xd4b   : > { %v2459_v40 = vadd.f32 %v1141_v38, %v1140_v39 }
 0xd4d   : > { %1156 = vrot.lane.b32.xlu1 %v2459_v40, %s2135_s11 }
 0xdbf   : > { %v1157_v41 = vpop.permute.xlu1 %1156 }
 0xdc0   : > { %1963 = vmatmul.mubr.msk.f32.vlgmr.msra.gmra.mrb[6].mxu1 %vm434_vm1, %v1157_v41 }
 0xdc1   : > { %2039 = vmatpush3.bf16.msra.mxu1 %v2282_v17  ;;  %1984 = vmatprep.mubr.msk.f32.mxu1 %vm2132_vm0, %v2133_v16 }
 0xdc2   : > { %2040 = vmatprep.subr.bf16.mxu1 %v2131_v11 }
 0xdc5   : > { %2042 = vmatpush3.bf16.msra.mxu1 %v2294_v22 }
 0xe93   : > { %v1226_v42 = vpop.f32.mrb[6].mxu1 }
 0xe94   : > { %v1227_v43 = vadd.f32 %v2323_v24, %v1226_v42  ;;  %v1964_v44 = vpop.f32.mrb[7].mxu1 }
 0xe96   : > { %1240 = vrot.lane.b32.xlu0 %v1227_v43, %s2134_s20  ;;  %v1232_v46 = vadd.f32 %v1231_v45, %v1227_v43 }
 0xe98   : > { %v1810_v47 = vmul.f32 -1.442695, %v1232_v46 }
 0xe9a   : > { %2087 = vpow2.f32 %v1810_v47 }
 0xea4   : > { %v2088_v49 = vpop.eup %2087 }
 0xea5   : > { %v1236_v51 = vadd.f32 1.0, %v2088_v49 }
 0xea7   : > { %2089 = vrcp.f32 %v1236_v51 }
 0xeb1   : > { %v2090_v17 = vpop.eup %2089 }
 0xeb2   : > { %v1250_v54 = vsub.f32 1.0, %v2090_v17  ;;  %v1256_v56 = vmul.f32 %v2090_v17, %v2459_v40 }
 0xf08   : > { %v1241_v52 = vpop.permute.xlu0 %1240 }
 0xf09   : > { %v1243_v16 = vmul.f32 %v2090_v17, %v1241_v52 }
 0xf0b   : > { %1245 = vrot.lane.b32.xlu1 %v1243_v16, %s2134_s20 }
 0xf7d   : > { %v1246_v11 = vpop.permute.xlu1 %1245 }
 0xf7e   : > { %v1248_v22 = vadd.f32 %v1246_v11, %v1231_v45 }
 0xf80   : > { %2091 = vtanh.f32 %v1248_v22 }
 0xf8a   : > { %v2092_v53 = vpop.eup %2091 }
 0xf8b   : > { %1252 = vrot.lane.b32.xlu0 %v2092_v53, %s2135_s11 }
 0xffd   : > { %v1253_v55 = vpop.permute.xlu0 %1252 }
 0xffe   : > { %v1255_v57 = vmul.f32 %v1253_v55, %v1250_v54 }
0x1000   : > { %v2474_v58 = vadd.f32 %v1256_v56, %v1255_v57 }
0x1002   : > { %1271 = vrot.lane.b32.xlu1 %v2474_v58, %s2135_s11 }
0x1074   : > { %v1272_v59 = vpop.permute.xlu1 %1271 }
0x1075   : > { %1974 = vmatmul.mubr.msk.f32.vlgmr.msra.gmra.mrb[12].mxu0 %vm434_vm1, %v1272_v59 }
0x1148   : > { %v1341_v60 = vpop.f32.mrb[12].mxu0 }
0x1149   : > { %v1342_v61 = vadd.f32 %v2323_v24, %v1341_v60  ;;  %v1975_v62 = vpop.f32.mrb[13].mxu0 }
0x114b   : > { %1355 = vrot.lane.b32.xlu0 %v1342_v61, %s2134_s20  ;;  %v1347_v6 = vadd.f32 %v1346_v5, %v1342_v61 }
0x114d   : > { %v1814_v7 = vmul.f32 -1.442695, %v1347_v6 }
0x114f   : > { %2093 = vpow2.f32 %v1814_v7 }
0x1159   : > { %v2094_v8 = vpop.eup %2093 }
0x115a   : > { %v1351_v9 = vadd.f32 1.0, %v2094_v8 }
0x115c   : > { %2095 = vrcp.f32 %v1351_v9 }
0x1166   : > { %v2096_v12 = vpop.eup %2095 }
0x1167   : > { %v1365_v26 = vsub.f32 1.0, %v2096_v12  ;;  %v1371_v28 = vmul.f32 %v2096_v12, %v2474_v58 }
0x11bd   : > { %v1356_v13 = vpop.permute.xlu0 %1355 }
0x11be   : > { %v1358_v15 = vmul.f32 %v2096_v12, %v1356_v13 }
0x11c0   : > { %1360 = vrot.lane.b32.xlu1 %v1358_v15, %s2134_s20 }
0x1232   : > { %v1361_v18 = vpop.permute.xlu1 %1360 }
0x1233   : > { %v1363_v19 = vadd.f32 %v1361_v18, %v1346_v5 }
0x1235   : > { %2097 = vtanh.f32 %v1363_v19 }
0x123f   : > { %v2098_v20 = vpop.eup %2097 }
0x1240   : > { %1367 = vrot.lane.b32.xlu0 %v2098_v20, %s2135_s11 }
0x12b2   : > { %v1368_v27 = vpop.permute.xlu0 %1367 }
0x12b3   : > { %v1370_v29 = vmul.f32 %v1368_v27, %v1365_v26 }
0x12b5   : > { %v2484_v30 = vadd.f32 %v1371_v28, %v1370_v29 }
0x12b7   : > { %1386 = vrot.lane.b32.xlu1 %v2484_v30, %s2135_s11 }
0x1329   : > { %v1387_v31 = vpop.permute.xlu1 %1386 }
0x132a   : > { %1985 = vmatmul.mubr.msk.f32.vlgmr.msra.gmra.mrb[8].mxu1 %vm434_vm1, %v1387_v31 }
0x13fd   : > { %v1456_v32 = vpop.f32.mrb[8].mxu1 }
0x13fe   : > { %v1457_v25 = vadd.f32 %v2323_v24, %v1456_v32  ;;  %v1986_v33 = vpop.f32.mrb[9].mxu1 }
0x1400   : > { %1470 = vrot.lane.b32.xlu0 %v1457_v25, %s2134_s20  ;;  %v1462_v35 = vadd.f32 %v1461_v34, %v1457_v25 }
0x1402   : > { %v1818_v36 = vmul.f32 -1.442695, %v1462_v35 }
0x1404   : > { %801 = vrot.lane.b32.xlu0 %v2301_v23, %s2136_s9  ;;  %2099 = vpow2.f32 %v1818_v36 }
0x1408   : > { %1031 = vrot.lane.b32.xlu0 %v2362_v0, %s2136_s9 }
0x140c   : > { %1261 = vrot.lane.b32.xlu0 %v2378_v2, %s2136_s9 }
0x140e   : > { %v2100_v37 = vpop.eup %2099 }
0x140f   : > { %v1466_v38 = vadd.f32 1.0, %v2100_v37 }
0x1411   : > { %2101 = vrcp.f32 %v1466_v38 }
0x141b   : > { %v2102_v24 = vpop.eup %2101 }
0x141c   : > { %v1486_v11 = vmul.f32 %v2102_v24, %v2484_v30 }
0x1472   : > { %v1471_v39 = vpop.permute.xlu0 %1470 }
0x1473   : > { %v1473_v41 = vmul.f32 %v2102_v24, %v1471_v39 }
0x1475   : > { %1475 = vrot.lane.b32.xlu1 %v1473_v41, %s2134_s20 }
0x1476   : > { %v802_v45 = vpop.permute.xlu0 %801 }
0x1479   : > { %686 = vrot.lane.b32.xlu1 %v2289_v21, %s2136_s9 }
0x147d   : > { %916 = vrot.lane.b32.xlu1 %v2357_v63, %s2136_s9 }
0x1481   : > { %1146 = vrot.lane.b32.xlu1 %v2367_v1, %s2136_s9 }
0x1485   : > { %1376 = vrot.lane.b32.xlu1 %v2383_v3, %s2136_s9 }
0x14e7   : > { %v1476_v23 = vpop.permute.xlu1 %1475 }
0x14e8   : > { %v1478_v0 = vadd.f32 %v1476_v23, %v1461_v34 }
0x14ea   : > { %2103 = vtanh.f32 %v1478_v0 }
0x14eb   : > { %v687_v2 = vpop.permute.xlu1 %686 }
0x14ec   : > { %v689_v42 = vadd.f32 %v687_v2, %v2340_v48  ;;  %v1032_v48 = vpop.permute.xlu0 %1031 }
0x14ed   : > { %v1034_v47 = vadd.f32 %v1032_v48, %v2444_v14 }
0x14ee   : > { %691 = vrot.lane.b32.xlu1 %v689_v42, %s2135_s11 }
0x14ef   : > { %v917_v43 = vpop.permute.xlu1 %916 }
0x14f0   : > { %v919_v21 = vadd.f32 %v917_v43, %v2428_v50  ;;  %v804_v50 = vadd.f32 %v802_v45, %v2400_v10  ;;  %v1480_v10 = vsub.f32 1.0, %v2102_v24 }
0x14f2   : > { %921 = vrot.lane.b32.xlu1 %v919_v21, %s2135_s11 }
0x14f3   : > { %v1147_v63 = vpop.permute.xlu1 %1146 }
0x14f4   : > { %v2104_v44 = vpop.eup %2103  ;;  %v1149_v1 = vadd.f32 %v1147_v63, %v2459_v40  ;;  %v1262_v40 = vpop.permute.xlu0 %1261 }
0x14f5   : > { %1482 = vrot.lane.b32.xlu0 %v2104_v44, %s2135_s11  ;;  %v1264_v49 = vadd.f32 %v1262_v40, %v2474_v58 }
0x14f6   : > { %1151 = vrot.lane.b32.xlu1 %v1149_v1, %s2135_s11 }
0x14f7   : > { %v1377_v3 = vpop.permute.xlu1 %1376 }
0x14f8   : > { %v1379_v46 = vadd.f32 %v1377_v3, %v2484_v30 }
0x14f9   : > { %1491 = vrot.lane.b32.xlu0 %v2392_v4, %s2136_s9 }
0x14fa   : > { %1381 = vrot.lane.b32.xlu1 %v1379_v46, %s2135_s11 }
0x14fd   : > { %806 = vrot.lane.b32.xlu0 %v804_v50, %s2135_s11 }
0x1501   : > { %1036 = vrot.lane.b32.xlu0 %v1034_v47, %s2135_s11 }
0x1505   : > { %1266 = vrot.lane.b32.xlu0 %v1264_v49, %s2135_s11 }
0x1560   : > { %v692_v51 = vpop.permute.xlu1 %691 }
0x1561   : > { %694 = vst.msk [vmem:[%s2711_s7] sm:$0xff] %vm434_vm1, %v692_v51 }
0x1564   : > { %v922_v4 = vpop.permute.xlu1 %921 }
0x1565   : > { %1800 = vst.msk [vmem:[%s2711_s7 + $0x10] sm:$0xff] %vm434_vm1, %v922_v4 }
0x1567   : > { %v1483_v14 = vpop.permute.xlu0 %1482 }
0x1568   : > { %v1485_v17 = vmul.f32 %v1483_v14, %v1480_v10  ;;  %v1152_v52 = vpop.permute.xlu1 %1151  ;;  %v1505_v16 = vld [vmem:[%s2711_s7] sm:$0xff] }
0x1569   : > { %1808 = vst.msk [vmem:[%s2711_s7 + $0x20] sm:$0xff] %vm434_vm1, %v1152_v52  ;;  %v1513_v22 = vsel %vm434_vm1, %v1505_v16, 0.0 }
0x156a   : > { %1514 = vadd.xlane.f32.xlu1 %v1513_v22  ;;  %v2540_v53 = vadd.f32 %v1486_v11, %v1485_v17 }
0x156b   : > { %v1492_v54 = vpop.permute.xlu0 %1491 }
0x156c   : > { %v1494_v55 = vadd.f32 %v1492_v54, %v2540_v53  ;;  %v1382_v56 = vpop.permute.xlu1 %1381  ;;  %v1507_v8 = vld [vmem:[%s2711_s7 + $0x10] sm:$0xff] }
0x156d   : > { %1816 = vst.msk [vmem:[%s2711_s7 + $0x30] sm:$0xff] %vm434_vm1, %v1382_v56  ;;  %v1519_v9 = vsel %vm434_vm1, %v1507_v8, 0.0 }
0x156e   : > { %1496 = vrot.lane.b32.xlu0 %v1494_v55, %s2135_s11 }
0x156f   : > { %v807_v57 = vpop.permute.xlu0 %806 }
0x1570   : > { %1796 = vst.msk [vmem:[%s2711_s7 + $0x8] sm:$0xff] %vm434_vm1, %v807_v57  ;;  %v1509_v12 = vld [vmem:[%s2711_s7 + $0x20] sm:$0xff] }
0x1571   : > { %v1525_v13 = vsel %vm434_vm1, %v1509_v12, 0.0  ;;  %v2642_v57 = vld [vmem:[%s347_s26] ss:$0 sm:$0xff] }
0x1573   : > { %v1037_v58 = vpop.permute.xlu0 %1036 }
0x1574   : > { %1804 = vst.msk [vmem:[%s2711_s7 + $0x18] sm:$0xff] %vm434_vm1, %v1037_v58  ;;  %v1511_v15 = vld [vmem:[%s2711_s7 + $0x30] sm:$0xff] }
0x1575   : > { %v1531_v18 = vsel %vm434_vm1, %v1511_v15, 0.0 }
0x1577   : > { %v1267_v59 = vpop.permute.xlu0 %1266  ;;  %v1506_v6 = vld [vmem:[%s2711_s7 + $0x8] sm:$0xff] }
0x1578   : > { %1812 = vst.msk [vmem:[%s2711_s7 + $0x28] sm:$0xff] %vm434_vm1, %v1267_v59  ;;  %v1516_v7 = vsel %vm434_vm1, %v1506_v6, 0.0 }
0x157b   : > { %v1508_v60 = vld [vmem:[%s2711_s7 + $0x18] sm:$0xff] }
0x157c   : > { %v1522_v61 = vsel %vm434_vm1, %v1508_v60, 0.0 }
0x157d   : > { %1523 = vadd.xlane.f32.xlu1 %v1522_v61 }
0x157f   : > { %v1510_v62 = vld [vmem:[%s2711_s7 + $0x28] sm:$0xff] }
0x1580   : > { %v1528_v5 = vsel %vm434_vm1, %v1510_v62, 0.0 }
0x1581   : > { %1529 = vadd.xlane.f32.xlu1 %v1528_v5 }
0x158d   : > { %1517 = vadd.xlane.f32.xlu0 %v1516_v7 }
0x1591   : > { %1520 = vadd.xlane.f32.xlu0 %v1519_v9 }
0x1595   : > { %1526 = vadd.xlane.f32.xlu0 %v1525_v13 }
0x1599   : > { %1532 = vadd.xlane.f32.xlu0 %v1531_v18 }
0x15e0   : > { %v1497_v19 = vpop.permute.xlu0 %1496 }
0x15e1   : > { %1820 = vst.msk [vmem:[%s2711_s7 + $0x38] sm:$0xff] %vm434_vm1, %v1497_v19 }
0x15e8   : > { %v1512_v20 = vld [vmem:[%s2711_s7 + $0x38] sm:$0xff] }
0x15e9   : > { %v1534_v26 = vsel %vm434_vm1, %v1512_v20, 0.0 }
0x15ea   : > { %1535 = vadd.xlane.f32.xlu1 %v1534_v26 }
0x15f7   : > { %v1515_v27 = vpop.xlane.xlu1 %1514 }
0x15f8   : > { %v1538_v28 = vmul.f32 0.03125, %v1515_v27 }
0x15fa   : > { %v1546_v29 = vsub.f32 %v1505_v16, %v1538_v28 }
0x15fc   : > { %v1554_v30 = vmul.f32 %v1546_v29, %v1546_v29 }
0x15fe   : > { %v1562_v31 = vsel %vm434_vm1, %v1554_v30, 0.0 }
0x15ff   : > { %1563 = vadd.xlane.f32.xlu0 %v1562_v31 }
0x160a   : > { %v1524_v32 = vpop.xlane.xlu1 %1523 }
0x160b   : > { %v1541_v25 = vmul.f32 0.03125, %v1524_v32 }
0x160d   : > { %v2593_v36 = vsub.f32 %v1508_v60, %v1541_v25 }
0x160e   : > { %v1530_v33 = vpop.xlane.xlu1 %1529 }
0x160f   : > { %v1543_v37 = vmul.f32 0.03125, %v1530_v33  ;;  %v1557_v42 = vmul.f32 %v2593_v36, %v2593_v36 }
0x1611   : > { %v2599_v23 = vsub.f32 %v1510_v62, %v1543_v37  ;;  %v1571_v1 = vsel %vm434_vm1, %v1557_v42, 0.0 }
0x1613   : > { %v1559_v3 = vmul.f32 %v2599_v23, %v2599_v23 }
0x1615   : > { %v1577_v49 = vsel %vm434_vm1, %v1559_v3, 0.0 }
0x161a   : > { %v1518_v34 = vpop.xlane.xlu0 %1517 }
0x161b   : > { %v1539_v35 = vmul.f32 0.03125, %v1518_v34 }
0x161d   : > { %v2595_v38 = vsub.f32 %v1506_v6, %v1539_v35 }
0x161e   : > { %v1521_v24 = vpop.xlane.xlu0 %1520 }
0x161f   : > { %v1540_v39 = vmul.f32 0.03125, %v1521_v24  ;;  %v1555_v41 = vmul.f32 %v2595_v38, %v2595_v38 }
0x1621   : > { %v2601_v0 = vsub.f32 %v1507_v8, %v1540_v39  ;;  %v1565_v2 = vsel %vm434_vm1, %v1555_v41, 0.0 }
0x1622   : > { %1566 = vadd.xlane.f32.xlu1 %v1565_v2  ;;  %v1527_v43 = vpop.xlane.xlu0 %1526 }
0x1623   : > { %v1542_v21 = vmul.f32 0.03125, %v1527_v43  ;;  %v1556_v63 = vmul.f32 %v2601_v0, %v2601_v0 }
0x1625   : > { %v2608_v44 = vsub.f32 %v1509_v12, %v1542_v21  ;;  %v1568_v45 = vsel %vm434_vm1, %v1556_v63, 0.0 }
0x1626   : > { %v1533_v46 = vpop.xlane.xlu0 %1532  ;;  %1569 = vadd.xlane.f32.xlu0 %v1568_v45  ;;  %1572 = vadd.xlane.f32.xlu1 %v1571_v1 }
0x1627   : > { %v1544_v48 = vmul.f32 0.03125, %v1533_v46  ;;  %v1558_v50 = vmul.f32 %v2608_v44, %v2608_v44 }
0x1629   : > { %v2616_v47 = vsub.f32 %v1511_v15, %v1544_v48  ;;  %v1574_v40 = vsel %vm434_vm1, %v1558_v50, 0.0 }
0x162a   : > { %1575 = vadd.xlane.f32.xlu0 %v1574_v40  ;;  %1578 = vadd.xlane.f32.xlu1 %v1577_v49 }
0x162b   : > { %v1560_v51 = vmul.f32 %v2616_v47, %v2616_v47 }
0x162d   : > { %v1580_v4 = vsel %vm434_vm1, %v1560_v51, 0.0 }
0x162e   : > { %1581 = vadd.xlane.f32.xlu0 %v1580_v4 }
0x1644   : > { %1501 = vrot.lane.b32.xlu0 %v2540_v53, %s2135_s11  ;;  %v2635_v53 = vld [vmem:[%s344_s23] ss:$0 sm:$0xff] }
0x1677   : > { %v1536_v10 = vpop.xlane.xlu1 %1535 }
0x1678   : > { %v1545_v14 = vmul.f32 0.03125, %v1536_v10 }
0x167a   : > { %v2625_v17 = vsub.f32 %v1512_v20, %v1545_v14 }
0x167c   : > { %v1561_v52 = vmul.f32 %v2625_v17, %v2625_v17 }
0x167e   : > { %v1583_v16 = vsel %vm434_vm1, %v1561_v52, 0.0 }
0x167f   : > { %1584 = vadd.xlane.f32.xlu1 %v1583_v16 }
0x168c   : > { %v1564_v11 = vpop.xlane.xlu0 %1563 }
0x168d   : > { %v1586_v22 = vmul.f32 0.03125, %v1564_v11 }
0x168f   : > { %v1594_v54 = vadd.f32 1e-05, %v1586_v22 }
0x1691   : > { %2105 = vrsqrt.f32 %v1594_v54 }
0x169b   : > { %v2106_v55 = vpop.eup %2105 }
0x169c   : > { %v1610_v56 = vmul.f32 %v2106_v55, %v1546_v29 }
0x169e   : > { %v1625_v58 = vmul.f32 %v2635_v53, %v1610_v56 }
0x16a0   : > { %v1640_v59 = vadd.f32 %v2642_v57, %v1625_v58 }
0x16a2   : > { %1648 = vst.msk [vmem:[%s2711_s7] sm:$0xff] %vm434_vm1, %v1640_v59 }
0x16af   : > { %v1567_v60 = vpop.xlane.xlu1 %1566 }
0x16b0   : > { %v1587_v61 = vmul.f32 0.03125, %v1567_v60 }
0x16b2   : > { %v1595_v62 = vadd.f32 1e-05, %v1587_v61 }
0x16b3   : > { %v1570_v5 = vpop.xlane.xlu0 %1569  ;;  %v1573_v6 = vpop.xlane.xlu1 %1572 }
0x16b4   : > { %2107 = vrsqrt.f32 %v1595_v62  ;;  %v1588_v7 = vmul.f32 0.03125, %v1570_v5  ;;  %v1589_v8 = vmul.f32 0.03125, %v1573_v6 }
0x16b6   : > { %v1596_v9 = vadd.f32 1e-05, %v1588_v7  ;;  %v1597_v12 = vadd.f32 1e-05, %v1589_v8 }
0x16b7   : > { %v1576_v13 = vpop.xlane.xlu0 %1575  ;;  %v1579_v15 = vpop.xlane.xlu1 %1578 }
0x16b8   : > { %2109 = vrsqrt.f32 %v1596_v9  ;;  %v1590_v18 = vmul.f32 0.03125, %v1576_v13  ;;  %v1591_v19 = vmul.f32 0.03125, %v1579_v15 }
0x16b9   : > { %2111 = vrsqrt.f32 %v1597_v12 }
0x16ba   : > { %v1598_v20 = vadd.f32 1e-05, %v1590_v18  ;;  %v1599_v26 = vadd.f32 1e-05, %v1591_v19 }
0x16bb   : > { %v1582_v27 = vpop.xlane.xlu0 %1581 }
0x16bc   : > { %2113 = vrsqrt.f32 %v1598_v20  ;;  %v1592_v28 = vmul.f32 0.03125, %v1582_v27 }
0x16bd   : > { %2115 = vrsqrt.f32 %v1599_v26 }
0x16be   : > { %v2108_v29 = vpop.eup %2107  ;;  %v1600_v30 = vadd.f32 1e-05, %v1592_v28 }
0x16bf   : > { %v1611_v31 = vmul.f32 %v2108_v29, %v2595_v38  ;;  %v1502_v32 = vpop.permute.xlu0 %1501 }
0x16c0   : > { %2117 = vrsqrt.f32 %v1600_v30  ;;  %1504 = vst.msk [vmem:[%s2223_s13] sm:$0xff] %vm434_vm1, %v1502_v32 }
0x16c1   : > { %v1626_v25 = vmul.f32 %v2635_v53, %v1611_v31 }
0x16c2   : > { %v2110_v33 = vpop.eup %2109 }
0x16c3   : > { %v2112_v34 = vpop.eup %2111  ;;  %v1641_v35 = vadd.f32 %v2642_v57, %v1626_v25  ;;  %v1612_v37 = vmul.f32 %v2110_v33, %v2601_v0 }
0x16c4   : > { %v1613_v24 = vmul.f32 %v2112_v34, %v2593_v36 }
0x16c5   : > { %1649 = vst.msk [vmem:[%s2711_s7 + $0x8] sm:$0xff] %vm434_vm1, %v1641_v35  ;;  %v1627_v38 = vmul.f32 %v2635_v53, %v1612_v37 }
0x16c6   : > { %v2114_v39 = vpop.eup %2113  ;;  %v1628_v41 = vmul.f32 %v2635_v53, %v1613_v24 }
0x16c7   : > { %v2116_v2 = vpop.eup %2115  ;;  %v1642_v42 = vadd.f32 %v2642_v57, %v1627_v38  ;;  %v1614_v43 = vmul.f32 %v2114_v39, %v2608_v44 }
0x16c8   : > { %v1643_v21 = vadd.f32 %v2642_v57, %v1628_v41  ;;  %v1615_v0 = vmul.f32 %v2116_v2, %v2599_v23 }
0x16c9   : > { %1650 = vst.msk [vmem:[%s2711_s7 + $0x10] sm:$0xff] %vm434_vm1, %v1642_v42  ;;  %v1629_v36 = vmul.f32 %v2635_v53, %v1614_v43 }
0x16ca   : > { %v2118_v63 = vpop.eup %2117  ;;  %1651 = vst.msk [vmem:[%s2711_s7 + $0x18] sm:$0xff] %vm434_vm1, %v1643_v21  ;;  %v1630_v45 = vmul.f32 %v2635_v53, %v1615_v0 }
0x16cb   : > { %v1644_v44 = vadd.f32 %v2642_v57, %v1629_v36  ;;  %v1616_v1 = vmul.f32 %v2118_v63, %v2616_v47 }
0x16cc   : > { %v1645_v23 = vadd.f32 %v2642_v57, %v1630_v45 }
0x16cd   : > { %1652 = vst.msk [vmem:[%s2711_s7 + $0x20] sm:$0xff] %vm434_vm1, %v1644_v44  ;;  %v1631_v3 = vmul.f32 %v2635_v53, %v1616_v1 }
0x16ce   : > { %1653 = vst.msk [vmem:[%s2711_s7 + $0x28] sm:$0xff] %vm434_vm1, %v1645_v23 }
0x16cf   : > { %v1646_v46 = vadd.f32 %v2642_v57, %v1631_v3 }
0x16d1   : > { %1654 = vst.msk [vmem:[%s2711_s7 + $0x30] sm:$0xff] %vm434_vm1, %v1646_v46 }
0x170c   : > { %v1585_v48 = vpop.xlane.xlu1 %1584 }
0x170d   : > { %v1593_v50 = vmul.f32 0.03125, %v1585_v48 }
0x170f   : > { %v1601_v47 = vadd.f32 1e-05, %v1593_v50 }
0x1711   : > { %2119 = vrsqrt.f32 %v1601_v47 }
0x171b   : > { %v2120_v40 = vpop.eup %2119 }
0x171c   : > { %v1617_v49 = vmul.f32 %v2120_v40, %v2625_v17 }
0x171e   : > { %v1632_v51 = vmul.f32 %v2635_v53, %v1617_v49 }
0x1720   : > { %v1647_v4 = vadd.f32 %v2642_v57, %v1632_v51 }
0x1722   : > { %1655 = vst.msk [vmem:[%s2711_s7 + $0x38] sm:$0xff] %vm434_vm1, %v1647_v4 }
0x1723 PF: > { %s19_s27 = sadd.s32 1, %s2129_s27  }
0x1724   : > { %p16_p5 = scmp.ge.s32.totalorder %s19_s27, 4  }
0x1726   :  { %18 = sbr.rel (!%p16_p5) target bundleno = 1 (0x1), region = 158 }

</bundles_post_ra>
